<compile_context>
chip_gen: v7x
topology: tpu7x:2x2x1
jax: 0.10.0
libtpu: 0.0.40
codegen_flags: <defaults>
</compile_context>

<pallas_src>
import functools
import numpy as np
import jax
import jax.numpy as jnp
from jax.experimental import pallas as pl
from jax.experimental.pallas import tpu as pltpu

# ---------------- configuration (mirrors args used by Baseline_RNN.__init__) --
LATENTS     = 16    # args.latents  -> z0_dim, generative latent dim
REC_DIMS    = 32    # args.rec_dims -> encoder GRU latent dim
GRU_UNITS   = 64    # args.gru_units
UNITS       = 64    # args.units    (ODE-func hidden width)
GEN_LAYERS  = 1     # args.gen_layers
INPUT_DIM   = 16    # input_dim -> gen_data_dim ; encoder sees 2*INPUT_DIM (data||mask)
INPUT_INIT  = 7     # input_init
N_LABELS    = 1
CLASSIF_DIM = 50

N_TRAJ    = 8
N_TP_OBS  = 6
N_TP_PRED = 5

ENC_INPUT_DIM = 2 * INPUT_DIM             # last dim of x
CAT_DIM       = 2 * REC_DIMS + INPUT_DIM  # GRU gate-net input width


# =============================== parameter init ===============================
def _linear_params(key, fan_in, fan_out):
    """PyTorch-default-style uniform(-1/sqrt(fan_in), +1/sqrt(fan_in)) init."""
    k1, k2 = jax.random.split(key)
    bound = 1.0 / np.sqrt(fan_in)
    w = jax.random.uniform(k1, (fan_in, fan_out), jnp.float32, -bound, bound)
    b = jax.random.uniform(k2, (1, fan_out), jnp.float32, -bound, bound)
    return w, b


def init_params(seed=0):
    key = jax.random.PRNGKey(seed)
    keys = iter(jax.random.split(key, 32))
    p = {}
    # Encoder_z0_RNN.hidden_init : Linear(input_init, 2*rec_dims) + ReLU
    p["hi_w"], p["hi_b"] = _linear_params(next(keys), INPUT_INIT, 2 * REC_DIMS)
    # GRU_unit gates (latent*2 + input//2 -> gru_units -> latent)
    p["wu1"], p["bu1"] = _linear_params(next(keys), CAT_DIM, GRU_UNITS)
    p["wu2"], p["bu2"] = _linear_params(next(keys), GRU_UNITS, REC_DIMS)
    p["wr1"], p["br1"] = _linear_params(next(keys), CAT_DIM, GRU_UNITS)
    p["wr2"], p["br2"] = _linear_params(next(keys), GRU_UNITS, REC_DIMS)
    p["wn1"], p["bn1"] = _linear_params(next(keys), CAT_DIM, GRU_UNITS)
    p["wn2"], p["bn2"] = _linear_params(next(keys), GRU_UNITS, 2 * REC_DIMS)
    # Encoder_z0_RNN.transform_z0 : Linear(2*rec, 100) ReLU Linear(100, 2*latents)
    p["tz_w1"], p["tz_b1"] = _linear_params(next(keys), 2 * REC_DIMS, 100)
    p["tz_w2"], p["tz_b2"] = _linear_params(next(keys), 100, 2 * LATENTS)
    # _ODEfunc (gen_layers=1): Lin(lat,units) ReLU Lin(units,units) ReLU Lin(units,lat)
    p["ode_w0"], p["ode_b0"] = _linear_params(next(keys), LATENTS, UNITS)
    p["ode_w1"], p["ode_b1"] = _linear_params(next(keys), UNITS, UNITS)
    p["ode_w2"], p["ode_b2"] = _linear_params(next(keys), UNITS, LATENTS)
    # decoder : Linear(latents, gen_data_dim)
    p["dec_w"], p["dec_b"] = _linear_params(next(keys), LATENTS, INPUT_DIM)
    # classifier : Lin(z0,50) ReLU Lin(50,50) ReLU Lin(50,n_labels)
    p["cl_w1"], p["cl_b1"] = _linear_params(next(keys), LATENTS, CLASSIF_DIM)
    p["cl_w2"], p["cl_b2"] = _linear_params(next(keys), CLASSIF_DIM, CLASSIF_DIM)
    p["cl_w3"], p["cl_b3"] = _linear_params(next(keys), CLASSIF_DIM, N_LABELS)
    return p


# =============================== weight slab packing ==========================
def _pack_slab(blocks):
    """Pack (name, (r, c<=128) array) blocks into one (R, 128) f32 slab.

    Each block is zero-padded to 128 lanes and starts at an 8-aligned row, so
    in-kernel reads are aligned static slices and the whole parameter set is a
    single DMA."""
    offs, rows, r0 = {}, [], 0
    for name, a in blocks:
        a = a.astype(jnp.float32)
        r, c = a.shape
        assert c <= 128, name
        if c < 128:
            a = jnp.concatenate([a, jnp.zeros((r, 128 - c), jnp.float32)], axis=1)
        offs[name] = (r0, r, c)
        rows.append(a)
        pad = (-r) % 8
        if pad:
            rows.append(jnp.zeros((pad, 128), jnp.float32))
        r0 += r + pad
    return jnp.concatenate(rows, axis=0), offs


# =============================== fused Pallas kernel ===========================
def _fused_forward_kernel(data_ref, init_ref, slab_ref, dts_ref,
                          stats_ref, sol_ref, pred_ref,
                          *, offs, n_traj, n_tp_obs, n_tp_pred):
    dot = lambda a, b: jnp.dot(a, b, preferred_element_type=jnp.float32)
    relu = lambda v: jnp.maximum(v, 0.0)

    def blk(name):                       # static slice into the parameter slab
        o, r, c = offs[name]
        return slab_ref[o:o + r, :c]

    nt = n_traj
    rec2 = 2 * REC_DIMS                   # fused [mean|std] state width (64)

    # ---- Encoder_z0_RNN.hidden_init : ys = [y | s] ; ReLU>=0 so abs is a no-op
    ys = relu(dot(init_ref[...], blk("hi_w")) + blk("hi_b"))          # (nt, 64)

    # ---- hoisted x-path (independent of the recurrent state) -----------------
    x_all = data_ref[...]                                             # (n_tp*nt, 16)
    xur_pre = dot(x_all, blk("wur1_x")) + blk("bur1")                 # (n_tp*nt, 128)
    xn_pre = dot(x_all, blk("wn1_x")) + blk("bn1")                    # (n_tp*nt, 64)

    # ---- loop-invariant GRU weights / pre-broadcast biases -------------------
    w_ur = blk("wur1_ys")                                             # (64, 128)
    w_2u = blk("w2u_dup")                                             # (128, 64)
    w_2r = blk("w2r_dup")                                             # (128, 64)
    w_n1 = blk("wn1_ys")                                              # (64, 64)
    w_n2 = blk("wn2")                                                 # (64, 64)
    b_2u = jnp.broadcast_to(blk("b2u_dup"), (nt, rec2))
    b_2r = jnp.broadcast_to(blk("b2r_dup"), (nt, rec2))
    b_n2 = jnp.broadcast_to(blk("bn2"), (nt, rec2))
    std_lane = jax.lax.broadcasted_iota(jnp.int32, (nt, rec2), 1) >= REC_DIMS

    # ---- GRU recurrence over observed time points (statically unrolled) ------
    # RNN_enc=True -> masked_update branch of GRU_unit is skipped.
    for i in range(n_tp_obs):
        xur_i = xur_pre[i * nt:(i + 1) * nt, :]
        xn_i = xn_pre[i * nt:(i + 1) * nt, :]
        h_ur = relu(dot(ys, w_ur) + xur_i)                            # (nt, 128)
        ug = jax.nn.sigmoid(dot(h_ur, w_2u) + b_2u)                   # (nt, 64) = [u|u]
        rg = jax.nn.sigmoid(dot(h_ur, w_2r) + b_2r)                   # (nt, 64) = [r|r]
        h_n = relu(dot(ys * rg, w_n1) + xn_i)                         # (nt, 64)
        new = dot(h_n, w_n2) + b_n2                                   # (nt, 64) = [m|s]
        new = jnp.where(std_lane, jnp.abs(new), new)                  # abs on std half
        ys = (1.0 - ug) * new + ug * ys

    # ---- Encoder_z0_RNN.transform_z0 ------------------------------------------
    h = relu(dot(ys, blk("tz_w1")) + blk("tz_b1"))                    # (nt, 100)
    z = dot(h, blk("tz_w2")) + blk("tz_b2")                           # (nt, 32) = [mean|std]
    mean_z0 = z[:, :LATENTS]                                          # (nt, 16)

    # ---- classifier (eval path: first_point_enc == first_point_mu) -----------
    hc = relu(dot(mean_z0, blk("cl_w1")) + blk("cl_b1"))
    hc = relu(dot(hc, blk("cl_w2")) + blk("cl_b2"))
    logits = dot(hc, blk("cl_w3")) + blk("cl_b3")                     # (nt, 1)

    lane32 = jax.lax.broadcasted_iota(jnp.int32, (nt, 2 * LATENTS), 1) >= LATENTS
    z_ms = jnp.where(lane32, jnp.abs(z), z)                           # abs on std half
    stats_ref[...] = jnp.concatenate([z_ms, logits], axis=1)          # (nt, 33)

    # ---- DiffeqSolver_Resnet + decoder ----------------------------------------
    # TODO(synk): DiffeqSolver_Resnet source was not provided; implemented as a
    # residual Euler integrator z_{i+1} = z_i + dt_i * ode_func(z_i).
    w0, b0 = blk("ode_w0"), jnp.broadcast_to(blk("ode_b0"), (nt, UNITS))
    w1, b1 = blk("ode_w1"), jnp.broadcast_to(blk("ode_b1"), (nt, UNITS))
    w2, b2 = blk("ode_w2"), jnp.broadcast_to(blk("ode_b2"), (nt, LATENTS))
    zlat = mean_z0
    zs = [zlat]
    for i in range(n_tp_pred - 1):
        g0 = relu(dot(zlat, w0) + b0)
        g1 = relu(dot(g0, w1) + b1)
        zlat = zlat + dts_ref[i] * (dot(g1, w2) + b2)                 # scalar dt from SMEM
        zs.append(zlat)
    sol_cat = jnp.concatenate(zs, axis=1) if n_tp_pred > 1 else zs[0]  # (nt, P*16)
    sol_ref[...] = sol_cat
    # decoder applied to every solver step at once via block-diagonal weight
    pred_ref[...] = dot(sol_cat, blk("dec_blk")) + blk("dec_b_t")      # (nt, P*16)


# =============================== full forward ==================================
def baseline_rnn_forward(p, x, time_steps_observed, time_steps_to_predict, init_data):
    n_traj, n_tp, n_dims = x.shape
    assert n_dims == ENC_INPUT_DIM and n_tp == time_steps_observed.shape[0]
    n_tp_pred = time_steps_to_predict.shape[0]
    rec = REC_DIMS
    assert n_tp_pred * LATENTS <= 128 and n_tp_pred * INPUT_DIM <= 128

    # ---- trace-time weight fusion (constant-folded under jit) ----------------
    wur1 = jnp.concatenate([p["wu1"], p["wr1"]], axis=1)              # (80, 128)
    bur1 = jnp.concatenate([p["bu1"], p["br1"]], axis=1)              # (1, 128)
    # gate second layers emit duplicated columns ([u|u], [r|r]); rows zero-padded
    # so the fused first-layer hidden never needs a lane split.
    w2u_dup = jnp.concatenate(
        [jnp.concatenate([p["wu2"], p["wu2"]], axis=1),
         jnp.zeros((GRU_UNITS, 2 * rec), jnp.float32)], axis=0)       # (128, 64)
    w2r_dup = jnp.concatenate(
        [jnp.zeros((GRU_UNITS, 2 * rec), jnp.float32),
         jnp.concatenate([p["wr2"], p["wr2"]], axis=1)], axis=0)      # (128, 64)
    b2u_dup = jnp.concatenate([p["bu2"], p["bu2"]], axis=1)           # (1, 64)
    b2r_dup = jnp.concatenate([p["br2"], p["br2"]], axis=1)           # (1, 64)
    # block-diagonal decoder so all predicted steps decode in one dot
    dec_blk = jnp.kron(jnp.eye(n_tp_pred, dtype=jnp.float32), p["dec_w"])
    dec_b_t = jnp.tile(p["dec_b"], (1, n_tp_pred))                    # (1, P*16)

    blocks = [
        ("hi_w", p["hi_w"]), ("hi_b", p["hi_b"]),
        ("wur1_ys", wur1[:2 * rec]), ("wur1_x", wur1[2 * rec:]), ("bur1", bur1),
        ("w2u_dup", w2u_dup), ("b2u_dup", b2u_dup),
        ("w2r_dup", w2r_dup), ("b2r_dup", b2r_dup),
        ("wn1_ys", p["wn1"][:2 * rec]), ("wn1_x", p["wn1"][2 * rec:]), ("bn1", p["bn1"]),
        ("wn2", p["wn2"]), ("bn2", p["bn2"]),
        ("tz_w1", p["tz_w1"]), ("tz_b1", p["tz_b1"]),
        ("tz_w2", p["tz_w2"]), ("tz_b2", p["tz_b2"]),
        ("ode_w0", p["ode_w0"]), ("ode_b0", p["ode_b0"]),
        ("ode_w1", p["ode_w1"]), ("ode_b1", p["ode_b1"]),
        ("ode_w2", p["ode_w2"]), ("ode_b2", p["ode_b2"]),
        ("dec_blk", dec_blk), ("dec_b_t", dec_b_t),
        ("cl_w1", p["cl_w1"]), ("cl_b1", p["cl_b1"]),
        ("cl_w2", p["cl_w2"]), ("cl_b2", p["cl_b2"]),
        ("cl_w3", p["cl_w3"]), ("cl_b3", p["cl_b3"]),
    ]
    slab, offs = _pack_slab(blocks)

    # observation values only (mask half unused when RNN_enc=True), time-major rows
    data_t = jnp.transpose(x[..., :INPUT_DIM], (1, 0, 2)).astype(jnp.float32)
    data_t = data_t.reshape(n_tp * n_traj, INPUT_DIM)
    dts = (time_steps_to_predict[1:] - time_steps_to_predict[:-1]).astype(jnp.float32)
    if dts.shape[0] == 0:
        dts = jnp.zeros((1,), jnp.float32)

    out_shapes = (
        jax.ShapeDtypeStruct((n_traj, 2 * LATENTS + N_LABELS), jnp.float32),  # [mean|std|logit]
        jax.ShapeDtypeStruct((n_traj, n_tp_pred * LATENTS), jnp.float32),     # latent traj slab
        jax.ShapeDtypeStruct((n_traj, n_tp_pred * INPUT_DIM), jnp.float32),   # decoded traj slab
    )
    vmem = pltpu.MemorySpace.VMEM
    smem = pltpu.MemorySpace.SMEM

    stats, sol, pred = pl.pallas_call(
        functools.partial(_fused_forward_kernel, offs=offs, n_traj=n_traj,
                          n_tp_obs=n_tp, n_tp_pred=n_tp_pred),
        out_shape=out_shapes,
        in_specs=[pl.BlockSpec(memory_space=vmem),   # data (time-major rows)
                  pl.BlockSpec(memory_space=vmem),   # init_data
                  pl.BlockSpec(memory_space=vmem),   # parameter slab (single DMA)
                  pl.BlockSpec(memory_space=smem)],  # dts scalars
        out_specs=tuple(pl.BlockSpec(memory_space=vmem) for _ in out_shapes),
    )(data_t, init_data.astype(jnp.float32), slab, dts)

    mean_z0 = stats[:, :LATENTS]
    std_z0 = stats[:, LATENTS:2 * LATENTS]
    logits = stats[:, 2 * LATENTS:]

    first_point_mu = mean_z0[None]                   # (1, n_traj, latents)
    first_point_std = std_z0[None]
    first_point_enc = first_point_mu                 # eval path: no sampling
    sol_y = sol.reshape(n_traj, n_tp_pred, LATENTS)[None]
    pred_x = pred.reshape(n_traj, n_tp_pred, INPUT_DIM)[None]
    label_predictions = jnp.squeeze(logits[None], axis=-1)   # (1, n_traj)

    all_extra_info = {
        "first_point": (first_point_mu, first_point_std, first_point_enc),
        "latent_traj": sol_y,
        "label_predictions": label_predictions,
    }
    return pred_x, all_extra_info


# =============================== pure-JAX reference ============================
def reference_forward(p, x, time_steps_observed, time_steps_to_predict, init_data):
    relu = lambda v: jnp.maximum(v, 0.0)
    temp = relu(init_data @ p["hi_w"] + p["hi_b"])
    y = temp[:, :REC_DIMS]
    s = jnp.abs(temp[:, REC_DIMS:])
    for i in range(x.shape[1]):
        xi = x[:, i, :INPUT_DIM]
        yc = jnp.concatenate([y, s, xi], -1)
        ug = jax.nn.sigmoid(relu(yc @ p["wu1"] + p["bu1"]) @ p["wu2"] + p["bu2"])
        rg = jax.nn.sigmoid(relu(yc @ p["wr1"] + p["br1"]) @ p["wr2"] + p["br2"])
        cc = jnp.concatenate([y * rg, s * rg, xi], -1)
        ns_all = relu(cc @ p["wn1"] + p["bn1"]) @ p["wn2"] + p["bn2"]
        ns, ns_std = ns_all[:, :REC_DIMS], jnp.abs(ns_all[:, REC_DIMS:])
        y = (1.0 - ug) * ns + ug * y
        s = (1.0 - ug) * ns_std + ug * s
    z = relu(jnp.concatenate([y, s], -1) @ p["tz_w1"] + p["tz_b1"]) @ p["tz_w2"] + p["tz_b2"]
    mean_z0, std_z0 = z[:, :LATENTS], jnp.abs(z[:, LATENTS:])
    dts = time_steps_to_predict[1:] - time_steps_to_predict[:-1]
    zz, sols = mean_z0, []
    n_tp_pred = time_steps_to_predict.shape[0]
    for i in range(n_tp_pred):
        sols.append(zz)
        if i < n_tp_pred - 1:
            h = relu(zz @ p["ode_w0"] + p["ode_b0"])
            h = relu(h @ p["ode_w1"] + p["ode_b1"])
            zz = zz + dts[i] * (h @ p["ode_w2"] + p["ode_b2"])
    sol = jnp.stack(sols, 0)
    pred = sol @ p["dec_w"] + p["dec_b"]
    hc = relu(mean_z0 @ p["cl_w1"] + p["cl_b1"])
    hc = relu(hc @ p["cl_w2"] + p["cl_b2"])
    logits = hc @ p["cl_w3"] + p["cl_b3"]
    pred_x = jnp.transpose(pred, (1, 0, 2))[None]
    sol_y = jnp.transpose(sol, (1, 0, 2))[None]
    return pred_x, mean_z0[None], std_z0[None], sol_y, jnp.squeeze(logits[None], -1)


# =============================== main ==========================================
if __name__ == "__main__":
    params = init_params(seed=0)

    key = jax.random.PRNGKey(0)
    kx, km, ki = jax.random.split(key, 3)
    x_vals = jax.random.normal(kx, (N_TRAJ, N_TP_OBS, INPUT_DIM), jnp.float32)
    x_mask = (jax.random.uniform(km, (N_TRAJ, N_TP_OBS, INPUT_DIM)) > 0.3).astype(jnp.float32)
    x = jnp.concatenate([x_vals * x_mask, x_mask], axis=-1)      # (n_traj, n_tp, 2*input_dim)
    time_steps_observed = jnp.linspace(0.0, 1.0, N_TP_OBS).astype(jnp.float32)
    time_steps_to_predict = jnp.linspace(0.0, 1.0, N_TP_PRED).astype(jnp.float32)
    init_data = jax.random.normal(ki, (N_TRAJ, INPUT_INIT), jnp.float32)

    fwd = jax.jit(functools.partial(baseline_rnn_forward, params))
    pred_x, extra = fwd(x, time_steps_observed, time_steps_to_predict, init_data)
    jax.block_until_ready(pred_x)
    jax.block_until_ready(extra["first_point"][0])
    jax.block_until_ready(extra["label_predictions"])

    # shape / invariant checks
    assert pred_x.shape == (1, N_TRAJ, N_TP_PRED, INPUT_DIM)
    assert extra["first_point"][0].shape == (1, N_TRAJ, LATENTS)
    assert extra["latent_traj"].shape == (1, N_TRAJ, N_TP_PRED, LATENTS)
    assert extra["label_predictions"].shape == (1, N_TRAJ)
    assert bool(jnp.all(extra["first_point"][1] >= 0))

    # numerical check against a pure-JAX reference of the same forward pass
    with jax.default_matmul_precision("highest"):
        r_pred, r_mu, r_std, r_sol, r_lab = reference_forward(
            params, x, time_steps_observed, time_steps_to_predict, init_data)
    tol = dict(atol=2e-3, rtol=2e-3)
    assert np.allclose(np.asarray(pred_x), np.asarray(r_pred), **tol)
    assert np.allclose(np.asarray(extra["first_point"][0]), np.asarray(r_mu), **tol)
    assert np.allclose(np.asarray(extra["first_point"][1]), np.asarray(r_std), **tol)
    assert np.allclose(np.asarray(extra["latent_traj"]), np.asarray(r_sol), **tol)
    assert np.allclose(np.asarray(extra["label_predictions"]), np.asarray(r_lab), **tol)

    print("KERNEL_OK")
</pallas_src>

<mosaic_0001>
module attributes {stable_mosaic.version = 11 : i64} {
  func.func @_fused_forward_kernel(%arg0: memref<48x16xf32, #tpu.memory_space<vmem>>, %arg1: memref<8x7xf32, #tpu.memory_space<vmem>>, %arg2: memref<1128x128xf32, #tpu.memory_space<vmem>>, %arg3: memref<4xf32, #tpu.memory_space<smem>>, %arg4: memref<8x33xf32, #tpu.memory_space<vmem>>, %arg5: memref<8x80xf32, #tpu.memory_space<vmem>>, %arg6: memref<8x80xf32, #tpu.memory_space<vmem>>) attributes {dimension_semantics = [], scalar_prefetch = 0 : i64, scratch_operands = 0 : i64, tpu.core_type = #tpu.core_type<tc>} {
    %c0 = arith.constant 0 : index
    %c0_0 = arith.constant 0 : index
    %0 = vector.load %arg1[%c0, %c0_0] : memref<8x7xf32, #tpu.memory_space<vmem>>, vector<8x7xf32>
    %c0_1 = arith.constant 0 : index
    %c0_2 = arith.constant 0 : index
    %1 = vector.load %arg2[%c0_1, %c0_2] : memref<1128x128xf32, #tpu.memory_space<vmem>>, vector<7x64xf32>
    %cst = arith.constant dense<0.000000e+00> : vector<8x64xf32>
    %2 = tpu.matmul %0, %1, %cst {dimension_numbers = #tpu.dot_dimension_numbers<[1], [0], [0], [1], [0, 0, 1, 1], [], []>} : vector<8x7xf32>, vector<7x64xf32>, vector<8x64xf32> -> vector<8x64xf32>
    %c8 = arith.constant 8 : index
    %c0_3 = arith.constant 0 : index
    %3 = vector.load %arg2[%c8, %c0_3] : memref<1128x128xf32, #tpu.memory_space<vmem>>, vector<1x64xf32>
    %4 = vector.broadcast %3 : vector<1x64xf32> to vector<8x64xf32>
    %5 = arith.addf %2, %4 : vector<8x64xf32>
    %cst_4 = arith.constant 0.000000e+00 : f32
    %6 = vector.broadcast %cst_4 : f32 to vector<8x64xf32>
    %7 = arith.maximumf %5, %6 : vector<8x64xf32>
    %c0_5 = arith.constant 0 : index
    %c0_6 = arith.constant 0 : index
    %8 = vector.load %arg0[%c0_5, %c0_6] : memref<48x16xf32, #tpu.memory_space<vmem>>, vector<48x16xf32>
    %c80 = arith.constant 80 : index
    %c0_7 = arith.constant 0 : index
    %9 = vector.load %arg2[%c80, %c0_7] : memref<1128x128xf32, #tpu.memory_space<vmem>>, vector<16x128xf32>
    %cst_8 = arith.constant dense<0.000000e+00> : vector<48x128xf32>
    %10 = tpu.matmul %8, %9, %cst_8 {dimension_numbers = #tpu.dot_dimension_numbers<[1], [0], [0], [1], [0, 0, 1, 1], [], []>} : vector<48x16xf32>, vector<16x128xf32>, vector<48x128xf32> -> vector<48x128xf32>
    %c96 = arith.constant 96 : index
    %c0_9 = arith.constant 0 : index
    %11 = vector.load %arg2[%c96, %c0_9] : memref<1128x128xf32, #tpu.memory_space<vmem>>, vector<1x128xf32>
    %12 = vector.broadcast %11 : vector<1x128xf32> to vector<48x128xf32>
    %13 = arith.addf %10, %12 : vector<48x128xf32>
    %c440 = arith.constant 440 : index
    %c0_10 = arith.constant 0 : index
    %14 = vector.load %arg2[%c440, %c0_10] : memref<1128x128xf32, #tpu.memory_space<vmem>>, vector<16x64xf32>
    %cst_11 = arith.constant dense<0.000000e+00> : vector<48x64xf32>
    %15 = tpu.matmul %8, %14, %cst_11 {dimension_numbers = #tpu.dot_dimension_numbers<[1], [0], [0], [1], [0, 0, 1, 1], [], []>} : vector<48x16xf32>, vector<16x64xf32>, vector<48x64xf32> -> vector<48x64xf32>
    %c456 = arith.constant 456 : index
    %c0_12 = arith.constant 0 : index
    %16 = vector.load %arg2[%c456, %c0_12] : memref<1128x128xf32, #tpu.memory_space<vmem>>, vector<1x64xf32>
    %17 = vector.broadcast %16 : vector<1x64xf32> to vector<48x64xf32>
    %18 = arith.addf %15, %17 : vector<48x64xf32>
    %c16 = arith.constant 16 : index
    %c0_13 = arith.constant 0 : index
    %19 = vector.load %arg2[%c16, %c0_13] : memref<1128x128xf32, #tpu.memory_space<vmem>>, vector<64x128xf32>
    %c104 = arith.constant 104 : index
    %c0_14 = arith.constant 0 : index
    %20 = vector.load %arg2[%c104, %c0_14] : memref<1128x128xf32, #tpu.memory_space<vmem>>, vector<128x64xf32>
    %c240 = arith.constant 240 : index
    %c0_15 = arith.constant 0 : index
    %21 = vector.load %arg2[%c240, %c0_15] : memref<1128x128xf32, #tpu.memory_space<vmem>>, vector<128x64xf32>
    %c376 = arith.constant 376 : index
    %c0_16 = arith.constant 0 : index
    %22 = vector.load %arg2[%c376, %c0_16] : memref<1128x128xf32, #tpu.memory_space<vmem>>, vector<64x64xf32>
    %c464 = arith.constant 464 : index
    %c0_17 = arith.constant 0 : index
    %23 = vector.load %arg2[%c464, %c0_17] : memref<1128x128xf32, #tpu.memory_space<vmem>>, vector<64x64xf32>
    %c232 = arith.constant 232 : index
    %c0_18 = arith.constant 0 : index
    %24 = vector.load %arg2[%c232, %c0_18] : memref<1128x128xf32, #tpu.memory_space<vmem>>, vector<1x64xf32>
    %25 = vector.shape_cast %24 : vector<1x64xf32> to vector<1x64xf32>
    %26 = vector.broadcast %25 : vector<1x64xf32> to vector<8x64xf32>
    %c368 = arith.constant 368 : index
    %c0_19 = arith.constant 0 : index
    %27 = vector.load %arg2[%c368, %c0_19] : memref<1128x128xf32, #tpu.memory_space<vmem>>, vector<1x64xf32>
    %28 = vector.shape_cast %27 : vector<1x64xf32> to vector<1x64xf32>
    %29 = vector.broadcast %28 : vector<1x64xf32> to vector<8x64xf32>
    %c528 = arith.constant 528 : index
    %c0_20 = arith.constant 0 : index
    %30 = vector.load %arg2[%c528, %c0_20] : memref<1128x128xf32, #tpu.memory_space<vmem>>, vector<1x64xf32>
    %31 = vector.shape_cast %30 : vector<1x64xf32> to vector<1x64xf32>
    %32 = vector.broadcast %31 : vector<1x64xf32> to vector<8x64xf32>
    %33 = tpu.iota {dimensions = array<i32: 1>} : vector<8x64xi32>
    %c32_i32 = arith.constant 32 : i32
    %34 = vector.broadcast %c32_i32 : i32 to vector<8x64xi32>
    %35 = arith.cmpi sge, %33, %34 : vector<8x64xi32>
    %36 = vector.extract_strided_slice %13 {offsets = [0, 0], sizes = [8, 128], strides = [1, 1]} : vector<48x128xf32> to vector<8x128xf32>
    %37 = vector.extract_strided_slice %18 {offsets = [0, 0], sizes = [8, 64], strides = [1, 1]} : vector<48x64xf32> to vector<8x64xf32>
    %cst_21 = arith.constant dense<0.000000e+00> : vector<8x128xf32>
    %38 = tpu.matmul %7, %19, %cst_21 {dimension_numbers = #tpu.dot_dimension_numbers<[1], [0], [0], [1], [0, 0, 1, 1], [], []>} : vector<8x64xf32>, vector<64x128xf32>, vector<8x128xf32> -> vector<8x128xf32>
    %39 = arith.addf %38, %36 : vector<8x128xf32>
    %cst_22 = arith.constant 0.000000e+00 : f32
    %40 = vector.broadcast %cst_22 : f32 to vector<8x128xf32>
    %41 = arith.maximumf %39, %40 : vector<8x128xf32>
    %cst_23 = arith.constant dense<0.000000e+00> : vector<8x64xf32>
    %42 = tpu.matmul %41, %20, %cst_23 {dimension_numbers = #tpu.dot_dimension_numbers<[1], [0], [0], [1], [0, 0, 1, 1], [], []>} : vector<8x128xf32>, vector<128x64xf32>, vector<8x64xf32> -> vector<8x64xf32>
    %43 = arith.addf %42, %26 : vector<8x64xf32>
    %44 = arith.negf %43 : vector<8x64xf32>
    %45 = math.exp %44 : vector<8x64xf32>
    %cst_24 = arith.constant 1.000000e+00 : f32
    %46 = vector.broadcast %cst_24 : f32 to vector<8x64xf32>
    %47 = arith.addf %46, %45 : vector<8x64xf32>
    %48 = arith.divf %46, %47 : vector<8x64xf32>
    %cst_25 = arith.constant dense<0.000000e+00> : vector<8x64xf32>
    %49 = tpu.matmul %41, %21, %cst_25 {dimension_numbers = #tpu.dot_dimension_numbers<[1], [0], [0], [1], [0, 0, 1, 1], [], []>} : vector<8x128xf32>, vector<128x64xf32>, vector<8x64xf32> -> vector<8x64xf32>
    %50 = arith.addf %49, %29 : vector<8x64xf32>
    %51 = arith.negf %50 : vector<8x64xf32>
    %52 = math.exp %51 : vector<8x64xf32>
    %cst_26 = arith.constant 1.000000e+00 : f32
    %53 = vector.broadcast %cst_26 : f32 to vector<8x64xf32>
    %54 = arith.addf %53, %52 : vector<8x64xf32>
    %55 = arith.divf %53, %54 : vector<8x64xf32>
    %56 = arith.mulf %7, %55 : vector<8x64xf32>
    %cst_27 = arith.constant dense<0.000000e+00> : vector<8x64xf32>
    %57 = tpu.matmul %56, %22, %cst_27 {dimension_numbers = #tpu.dot_dimension_numbers<[1], [0], [0], [1], [0, 0, 1, 1], [], []>} : vector<8x64xf32>, vector<64x64xf32>, vector<8x64xf32> -> vector<8x64xf32>
    %58 = arith.addf %57, %37 : vector<8x64xf32>
    %cst_28 = arith.constant 0.000000e+00 : f32
    %59 = vector.broadcast %cst_28 : f32 to vector<8x64xf32>
    %60 = arith.maximumf %58, %59 : vector<8x64xf32>
    %cst_29 = arith.constant dense<0.000000e+00> : vector<8x64xf32>
    %61 = tpu.matmul %60, %23, %cst_29 {dimension_numbers = #tpu.dot_dimension_numbers<[1], [0], [0], [1], [0, 0, 1, 1], [], []>} : vector<8x64xf32>, vector<64x64xf32>, vector<8x64xf32> -> vector<8x64xf32>
    %62 = arith.addf %61, %32 : vector<8x64xf32>
    %63 = math.absf %62 : vector<8x64xf32>
    %64 = arith.select %35, %63, %62 : vector<8x64xi1>, vector<8x64xf32>
    %cst_30 = arith.constant 1.000000e+00 : f32
    %65 = vector.broadcast %cst_30 : f32 to vector<8x64xf32>
    %66 = arith.subf %65, %48 : vector<8x64xf32>
    %67 = arith.mulf %66, %64 : vector<8x64xf32>
    %68 = arith.mulf %48, %7 : vector<8x64xf32>
    %69 = arith.addf %67, %68 : vector<8x64xf32>
    %70 = vector.extract_strided_slice %13 {offsets = [8, 0], sizes = [8, 128], strides = [1, 1]} : vector<48x128xf32> to vector<8x128xf32>
    %71 = vector.extract_strided_slice %18 {offsets = [8, 0], sizes = [8, 64], strides = [1, 1]} : vector<48x64xf32> to vector<8x64xf32>
    %cst_31 = arith.constant dense<0.000000e+00> : vector<8x128xf32>
    %72 = tpu.matmul %69, %19, %cst_31 {dimension_numbers = #tpu.dot_dimension_numbers<[1], [0], [0], [1], [0, 0, 1, 1], [], []>} : vector<8x64xf32>, vector<64x128xf32>, vector<8x128xf32> -> vector<8x128xf32>
    %73 = arith.addf %72, %70 : vector<8x128xf32>
    %cst_32 = arith.constant 0.000000e+00 : f32
    %74 = vector.broadcast %cst_32 : f32 to vector<8x128xf32>
    %75 = arith.maximumf %73, %74 : vector<8x128xf32>
    %cst_33 = arith.constant dense<0.000000e+00> : vector<8x64xf32>
    %76 = tpu.matmul %75, %20, %cst_33 {dimension_numbers = #tpu.dot_dimension_numbers<[1], [0], [0], [1], [0, 0, 1, 1], [], []>} : vector<8x128xf32>, vector<128x64xf32>, vector<8x64xf32> -> vector<8x64xf32>
    %77 = arith.addf %76, %26 : vector<8x64xf32>
    %78 = arith.negf %77 : vector<8x64xf32>
    %79 = math.exp %78 : vector<8x64xf32>
    %cst_34 = arith.constant 1.000000e+00 : f32
    %80 = vector.broadcast %cst_34 : f32 to vector<8x64xf32>
    %81 = arith.addf %80, %79 : vector<8x64xf32>
    %82 = arith.divf %80, %81 : vector<8x64xf32>
    %cst_35 = arith.constant dense<0.000000e+00> : vector<8x64xf32>
    %83 = tpu.matmul %75, %21, %cst_35 {dimension_numbers = #tpu.dot_dimension_numbers<[1], [0], [0], [1], [0, 0, 1, 1], [], []>} : vector<8x128xf32>, vector<128x64xf32>, vector<8x64xf32> -> vector<8x64xf32>
    %84 = arith.addf %83, %29 : vector<8x64xf32>
    %85 = arith.negf %84 : vector<8x64xf32>
    %86 = math.exp %85 : vector<8x64xf32>
    %cst_36 = arith.constant 1.000000e+00 : f32
    %87 = vector.broadcast %cst_36 : f32 to vector<8x64xf32>
    %88 = arith.addf %87, %86 : vector<8x64xf32>
    %89 = arith.divf %87, %88 : vector<8x64xf32>
    %90 = arith.mulf %69, %89 : vector<8x64xf32>
    %cst_37 = arith.constant dense<0.000000e+00> : vector<8x64xf32>
    %91 = tpu.matmul %90, %22, %cst_37 {dimension_numbers = #tpu.dot_dimension_numbers<[1], [0], [0], [1], [0, 0, 1, 1], [], []>} : vector<8x64xf32>, vector<64x64xf32>, vector<8x64xf32> -> vector<8x64xf32>
    %92 = arith.addf %91, %71 : vector<8x64xf32>
    %cst_38 = arith.constant 0.000000e+00 : f32
    %93 = vector.broadcast %cst_38 : f32 to vector<8x64xf32>
    %94 = arith.maximumf %92, %93 : vector<8x64xf32>
    %cst_39 = arith.constant dense<0.000000e+00> : vector<8x64xf32>
    %95 = tpu.matmul %94, %23, %cst_39 {dimension_numbers = #tpu.dot_dimension_numbers<[1], [0], [0], [1], [0, 0, 1, 1], [], []>} : vector<8x64xf32>, vector<64x64xf32>, vector<8x64xf32> -> vector<8x64xf32>
    %96 = arith.addf %95, %32 : vector<8x64xf32>
    %97 = math.absf %96 : vector<8x64xf32>
    %98 = arith.select %35, %97, %96 : vector<8x64xi1>, vector<8x64xf32>
    %cst_40 = arith.constant 1.000000e+00 : f32
    %99 = vector.broadcast %cst_40 : f32 to vector<8x64xf32>
    %100 = arith.subf %99, %82 : vector<8x64xf32>
    %101 = arith.mulf %100, %98 : vector<8x64xf32>
    %102 = arith.mulf %82, %69 : vector<8x64xf32>
    %103 = arith.addf %101, %102 : vector<8x64xf32>
    %104 = vector.extract_strided_slice %13 {offsets = [16, 0], sizes = [8, 128], strides = [1, 1]} : vector<48x128xf32> to vector<8x128xf32>
    %105 = vector.extract_strided_slice %18 {offsets = [16, 0], sizes = [8, 64], strides = [1, 1]} : vector<48x64xf32> to vector<8x64xf32>
    %cst_41 = arith.constant dense<0.000000e+00> : vector<8x128xf32>
    %106 = tpu.matmul %103, %19, %cst_41 {dimension_numbers = #tpu.dot_dimension_numbers<[1], [0], [0], [1], [0, 0, 1, 1], [], []>} : vector<8x64xf32>, vector<64x128xf32>, vector<8x128xf32> -> vector<8x128xf32>
    %107 = arith.addf %106, %104 : vector<8x128xf32>
    %cst_42 = arith.constant 0.000000e+00 : f32
    %108 = vector.broadcast %cst_42 : f32 to vector<8x128xf32>
    %109 = arith.maximumf %107, %108 : vector<8x128xf32>
    %cst_43 = arith.constant dense<0.000000e+00> : vector<8x64xf32>
    %110 = tpu.matmul %109, %20, %cst_43 {dimension_numbers = #tpu.dot_dimension_numbers<[1], [0], [0], [1], [0, 0, 1, 1], [], []>} : vector<8x128xf32>, vector<128x64xf32>, vector<8x64xf32> -> vector<8x64xf32>
    %111 = arith.addf %110, %26 : vector<8x64xf32>
    %112 = arith.negf %111 : vector<8x64xf32>
    %113 = math.exp %112 : vector<8x64xf32>
    %cst_44 = arith.constant 1.000000e+00 : f32
    %114 = vector.broadcast %cst_44 : f32 to vector<8x64xf32>
    %115 = arith.addf %114, %113 : vector<8x64xf32>
    %116 = arith.divf %114, %115 : vector<8x64xf32>
    %cst_45 = arith.constant dense<0.000000e+00> : vector<8x64xf32>
    %117 = tpu.matmul %109, %21, %cst_45 {dimension_numbers = #tpu.dot_dimension_numbers<[1], [0], [0], [1], [0, 0, 1, 1], [], []>} : vector<8x128xf32>, vector<128x64xf32>, vector<8x64xf32> -> vector<8x64xf32>
    %118 = arith.addf %117, %29 : vector<8x64xf32>
    %119 = arith.negf %118 : vector<8x64xf32>
    %120 = math.exp %119 : vector<8x64xf32>
    %cst_46 = arith.constant 1.000000e+00 : f32
    %121 = vector.broadcast %cst_46 : f32 to vector<8x64xf32>
    %122 = arith.addf %121, %120 : vector<8x64xf32>
    %123 = arith.divf %121, %122 : vector<8x64xf32>
    %124 = arith.mulf %103, %123 : vector<8x64xf32>
    %cst_47 = arith.constant dense<0.000000e+00> : vector<8x64xf32>
    %125 = tpu.matmul %124, %22, %cst_47 {dimension_numbers = #tpu.dot_dimension_numbers<[1], [0], [0], [1], [0, 0, 1, 1], [], []>} : vector<8x64xf32>, vector<64x64xf32>, vector<8x64xf32> -> vector<8x64xf32>
    %126 = arith.addf %125, %105 : vector<8x64xf32>
    %cst_48 = arith.constant 0.000000e+00 : f32
    %127 = vector.broadcast %cst_48 : f32 to vector<8x64xf32>
    %128 = arith.maximumf %126, %127 : vector<8x64xf32>
    %cst_49 = arith.constant dense<0.000000e+00> : vector<8x64xf32>
    %129 = tpu.matmul %128, %23, %cst_49 {dimension_numbers = #tpu.dot_dimension_numbers<[1], [0], [0], [1], [0, 0, 1, 1], [], []>} : vector<8x64xf32>, vector<64x64xf32>, vector<8x64xf32> -> vector<8x64xf32>
    %130 = arith.addf %129, %32 : vector<8x64xf32>
    %131 = math.absf %130 : vector<8x64xf32>
    %132 = arith.select %35, %131, %130 : vector<8x64xi1>, vector<8x64xf32>
    %cst_50 = arith.constant 1.000000e+00 : f32
    %133 = vector.broadcast %cst_50 : f32 to vector<8x64xf32>
    %134 = arith.subf %133, %116 : vector<8x64xf32>
    %135 = arith.mulf %134, %132 : vector<8x64xf32>
    %136 = arith.mulf %116, %103 : vector<8x64xf32>
    %137 = arith.addf %135, %136 : vector<8x64xf32>
    %138 = vector.extract_strided_slice %13 {offsets = [24, 0], sizes = [8, 128], strides = [1, 1]} : vector<48x128xf32> to vector<8x128xf32>
    %139 = vector.extract_strided_slice %18 {offsets = [24, 0], sizes = [8, 64], strides = [1, 1]} : vector<48x64xf32> to vector<8x64xf32>
    %cst_51 = arith.constant dense<0.000000e+00> : vector<8x128xf32>
    %140 = tpu.matmul %137, %19, %cst_51 {dimension_numbers = #tpu.dot_dimension_numbers<[1], [0], [0], [1], [0, 0, 1, 1], [], []>} : vector<8x64xf32>, vector<64x128xf32>, vector<8x128xf32> -> vector<8x128xf32>
    %141 = arith.addf %140, %138 : vector<8x128xf32>
    %cst_52 = arith.constant 0.000000e+00 : f32
    %142 = vector.broadcast %cst_52 : f32 to vector<8x128xf32>
    %143 = arith.maximumf %141, %142 : vector<8x128xf32>
    %cst_53 = arith.constant dense<0.000000e+00> : vector<8x64xf32>
    %144 = tpu.matmul %143, %20, %cst_53 {dimension_numbers = #tpu.dot_dimension_numbers<[1], [0], [0], [1], [0, 0, 1, 1], [], []>} : vector<8x128xf32>, vector<128x64xf32>, vector<8x64xf32> -> vector<8x64xf32>
    %145 = arith.addf %144, %26 : vector<8x64xf32>
    %146 = arith.negf %145 : vector<8x64xf32>
    %147 = math.exp %146 : vector<8x64xf32>
    %cst_54 = arith.constant 1.000000e+00 : f32
    %148 = vector.broadcast %cst_54 : f32 to vector<8x64xf32>
    %149 = arith.addf %148, %147 : vector<8x64xf32>
    %150 = arith.divf %148, %149 : vector<8x64xf32>
    %cst_55 = arith.constant dense<0.000000e+00> : vector<8x64xf32>
    %151 = tpu.matmul %143, %21, %cst_55 {dimension_numbers = #tpu.dot_dimension_numbers<[1], [0], [0], [1], [0, 0, 1, 1], [], []>} : vector<8x128xf32>, vector<128x64xf32>, vector<8x64xf32> -> vector<8x64xf32>
    %152 = arith.addf %151, %29 : vector<8x64xf32>
    %153 = arith.negf %152 : vector<8x64xf32>
    %154 = math.exp %153 : vector<8x64xf32>
    %cst_56 = arith.constant 1.000000e+00 : f32
    %155 = vector.broadcast %cst_56 : f32 to vector<8x64xf32>
    %156 = arith.addf %155, %154 : vector<8x64xf32>
    %157 = arith.divf %155, %156 : vector<8x64xf32>
    %158 = arith.mulf %137, %157 : vector<8x64xf32>
    %cst_57 = arith.constant dense<0.000000e+00> : vector<8x64xf32>
    %159 = tpu.matmul %158, %22, %cst_57 {dimension_numbers = #tpu.dot_dimension_numbers<[1], [0], [0], [1], [0, 0, 1, 1], [], []>} : vector<8x64xf32>, vector<64x64xf32>, vector<8x64xf32> -> vector<8x64xf32>
    %160 = arith.addf %159, %139 : vector<8x64xf32>
    %cst_58 = arith.constant 0.000000e+00 : f32
    %161 = vector.broadcast %cst_58 : f32 to vector<8x64xf32>
    %162 = arith.maximumf %160, %161 : vector<8x64xf32>
    %cst_59 = arith.constant dense<0.000000e+00> : vector<8x64xf32>
    %163 = tpu.matmul %162, %23, %cst_59 {dimension_numbers = #tpu.dot_dimension_numbers<[1], [0], [0], [1], [0, 0, 1, 1], [], []>} : vector<8x64xf32>, vector<64x64xf32>, vector<8x64xf32> -> vector<8x64xf32>
    %164 = arith.addf %163, %32 : vector<8x64xf32>
    %165 = math.absf %164 : vector<8x64xf32>
    %166 = arith.select %35, %165, %164 : vector<8x64xi1>, vector<8x64xf32>
    %cst_60 = arith.constant 1.000000e+00 : f32
    %167 = vector.broadcast %cst_60 : f32 to vector<8x64xf32>
    %168 = arith.subf %167, %150 : vector<8x64xf32>
    %169 = arith.mulf %168, %166 : vector<8x64xf32>
    %170 = arith.mulf %150, %137 : vector<8x64xf32>
    %171 = arith.addf %169, %170 : vector<8x64xf32>
    %172 = vector.extract_strided_slice %13 {offsets = [32, 0], sizes = [8, 128], strides = [1, 1]} : vector<48x128xf32> to vector<8x128xf32>
    %173 = vector.extract_strided_slice %18 {offsets = [32, 0], sizes = [8, 64], strides = [1, 1]} : vector<48x64xf32> to vector<8x64xf32>
    %cst_61 = arith.constant dense<0.000000e+00> : vector<8x128xf32>
    %174 = tpu.matmul %171, %19, %cst_61 {dimension_numbers = #tpu.dot_dimension_numbers<[1], [0], [0], [1], [0, 0, 1, 1], [], []>} : vector<8x64xf32>, vector<64x128xf32>, vector<8x128xf32> -> vector<8x128xf32>
    %175 = arith.addf %174, %172 : vector<8x128xf32>
    %cst_62 = arith.constant 0.000000e+00 : f32
    %176 = vector.broadcast %cst_62 : f32 to vector<8x128xf32>
    %177 = arith.maximumf %175, %176 : vector<8x128xf32>
    %cst_63 = arith.constant dense<0.000000e+00> : vector<8x64xf32>
    %178 = tpu.matmul %177, %20, %cst_63 {dimension_numbers = #tpu.dot_dimension_numbers<[1], [0], [0], [1], [0, 0, 1, 1], [], []>} : vector<8x128xf32>, vector<128x64xf32>, vector<8x64xf32> -> vector<8x64xf32>
    %179 = arith.addf %178, %26 : vector<8x64xf32>
    %180 = arith.negf %179 : vector<8x64xf32>
    %181 = math.exp %180 : vector<8x64xf32>
    %cst_64 = arith.constant 1.000000e+00 : f32
    %182 = vector.broadcast %cst_64 : f32 to vector<8x64xf32>
    %183 = arith.addf %182, %181 : vector<8x64xf32>
    %184 = arith.divf %182, %183 : vector<8x64xf32>
    %cst_65 = arith.constant dense<0.000000e+00> : vector<8x64xf32>
    %185 = tpu.matmul %177, %21, %cst_65 {dimension_numbers = #tpu.dot_dimension_numbers<[1], [0], [0], [1], [0, 0, 1, 1], [], []>} : vector<8x128xf32>, vector<128x64xf32>, vector<8x64xf32> -> vector<8x64xf32>
    %186 = arith.addf %185, %29 : vector<8x64xf32>
    %187 = arith.negf %186 : vector<8x64xf32>
    %188 = math.exp %187 : vector<8x64xf32>
    %cst_66 = arith.constant 1.000000e+00 : f32
    %189 = vector.broadcast %cst_66 : f32 to vector<8x64xf32>
    %190 = arith.addf %189, %188 : vector<8x64xf32>
    %191 = arith.divf %189, %190 : vector<8x64xf32>
    %192 = arith.mulf %171, %191 : vector<8x64xf32>
    %cst_67 = arith.constant dense<0.000000e+00> : vector<8x64xf32>
    %193 = tpu.matmul %192, %22, %cst_67 {dimension_numbers = #tpu.dot_dimension_numbers<[1], [0], [0], [1], [0, 0, 1, 1], [], []>} : vector<8x64xf32>, vector<64x64xf32>, vector<8x64xf32> -> vector<8x64xf32>
    %194 = arith.addf %193, %173 : vector<8x64xf32>
    %cst_68 = arith.constant 0.000000e+00 : f32
    %195 = vector.broadcast %cst_68 : f32 to vector<8x64xf32>
    %196 = arith.maximumf %194, %195 : vector<8x64xf32>
    %cst_69 = arith.constant dense<0.000000e+00> : vector<8x64xf32>
    %197 = tpu.matmul %196, %23, %cst_69 {dimension_numbers = #tpu.dot_dimension_numbers<[1], [0], [0], [1], [0, 0, 1, 1], [], []>} : vector<8x64xf32>, vector<64x64xf32>, vector<8x64xf32> -> vector<8x64xf32>
    %198 = arith.addf %197, %32 : vector<8x64xf32>
    %199 = math.absf %198 : vector<8x64xf32>
    %200 = arith.select %35, %199, %198 : vector<8x64xi1>, vector<8x64xf32>
    %cst_70 = arith.constant 1.000000e+00 : f32
    %201 = vector.broadcast %cst_70 : f32 to vector<8x64xf32>
    %202 = arith.subf %201, %184 : vector<8x64xf32>
    %203 = arith.mulf %202, %200 : vector<8x64xf32>
    %204 = arith.mulf %184, %171 : vector<8x64xf32>
    %205 = arith.addf %203, %204 : vector<8x64xf32>
    %206 = vector.extract_strided_slice %13 {offsets = [40, 0], sizes = [8, 128], strides = [1, 1]} : vector<48x128xf32> to vector<8x128xf32>
    %207 = vector.extract_strided_slice %18 {offsets = [40, 0], sizes = [8, 64], strides = [1, 1]} : vector<48x64xf32> to vector<8x64xf32>
    %cst_71 = arith.constant dense<0.000000e+00> : vector<8x128xf32>
    %208 = tpu.matmul %205, %19, %cst_71 {dimension_numbers = #tpu.dot_dimension_numbers<[1], [0], [0], [1], [0, 0, 1, 1], [], []>} : vector<8x64xf32>, vector<64x128xf32>, vector<8x128xf32> -> vector<8x128xf32>
    %209 = arith.addf %208, %206 : vector<8x128xf32>
    %cst_72 = arith.constant 0.000000e+00 : f32
    %210 = vector.broadcast %cst_72 : f32 to vector<8x128xf32>
    %211 = arith.maximumf %209, %210 : vector<8x128xf32>
    %cst_73 = arith.constant dense<0.000000e+00> : vector<8x64xf32>
    %212 = tpu.matmul %211, %20, %cst_73 {dimension_numbers = #tpu.dot_dimension_numbers<[1], [0], [0], [1], [0, 0, 1, 1], [], []>} : vector<8x128xf32>, vector<128x64xf32>, vector<8x64xf32> -> vector<8x64xf32>
    %213 = arith.addf %212, %26 : vector<8x64xf32>
    %214 = arith.negf %213 : vector<8x64xf32>
    %215 = math.exp %214 : vector<8x64xf32>
    %cst_74 = arith.constant 1.000000e+00 : f32
    %216 = vector.broadcast %cst_74 : f32 to vector<8x64xf32>
    %217 = arith.addf %216, %215 : vector<8x64xf32>
    %218 = arith.divf %216, %217 : vector<8x64xf32>
    %cst_75 = arith.constant dense<0.000000e+00> : vector<8x64xf32>
    %219 = tpu.matmul %211, %21, %cst_75 {dimension_numbers = #tpu.dot_dimension_numbers<[1], [0], [0], [1], [0, 0, 1, 1], [], []>} : vector<8x128xf32>, vector<128x64xf32>, vector<8x64xf32> -> vector<8x64xf32>
    %220 = arith.addf %219, %29 : vector<8x64xf32>
    %221 = arith.negf %220 : vector<8x64xf32>
    %222 = math.exp %221 : vector<8x64xf32>
    %cst_76 = arith.constant 1.000000e+00 : f32
    %223 = vector.broadcast %cst_76 : f32 to vector<8x64xf32>
    %224 = arith.addf %223, %222 : vector<8x64xf32>
    %225 = arith.divf %223, %224 : vector<8x64xf32>
    %226 = arith.mulf %205, %225 : vector<8x64xf32>
    %cst_77 = arith.constant dense<0.000000e+00> : vector<8x64xf32>
    %227 = tpu.matmul %226, %22, %cst_77 {dimension_numbers = #tpu.dot_dimension_numbers<[1], [0], [0], [1], [0, 0, 1, 1], [], []>} : vector<8x64xf32>, vector<64x64xf32>, vector<8x64xf32> -> vector<8x64xf32>
    %228 = arith.addf %227, %207 : vector<8x64xf32>
    %cst_78 = arith.constant 0.000000e+00 : f32
    %229 = vector.broadcast %cst_78 : f32 to vector<8x64xf32>
    %230 = arith.maximumf %228, %229 : vector<8x64xf32>
    %cst_79 = arith.constant dense<0.000000e+00> : vector<8x64xf32>
    %231 = tpu.matmul %230, %23, %cst_79 {dimension_numbers = #tpu.dot_dimension_numbers<[1], [0], [0], [1], [0, 0, 1, 1], [], []>} : vector<8x64xf32>, vector<64x64xf32>, vector<8x64xf32> -> vector<8x64xf32>
    %232 = arith.addf %231, %32 : vector<8x64xf32>
    %233 = math.absf %232 : vector<8x64xf32>
    %234 = arith.select %35, %233, %232 : vector<8x64xi1>, vector<8x64xf32>
    %cst_80 = arith.constant 1.000000e+00 : f32
    %235 = vector.broadcast %cst_80 : f32 to vector<8x64xf32>
    %236 = arith.subf %235, %218 : vector<8x64xf32>
    %237 = arith.mulf %236, %234 : vector<8x64xf32>
    %238 = arith.mulf %218, %205 : vector<8x64xf32>
    %239 = arith.addf %237, %238 : vector<8x64xf32>
    %c536 = arith.constant 536 : index
    %c0_81 = arith.constant 0 : index
    %240 = vector.load %arg2[%c536, %c0_81] : memref<1128x128xf32, #tpu.memory_space<vmem>>, vector<64x100xf32>
    %cst_82 = arith.constant dense<0.000000e+00> : vector<8x100xf32>
    %241 = tpu.matmul %239, %240, %cst_82 {dimension_numbers = #tpu.dot_dimension_numbers<[1], [0], [0], [1], [0, 0, 1, 1], [], []>} : vector<8x64xf32>, vector<64x100xf32>, vector<8x100xf32> -> vector<8x100xf32>
    %c600 = arith.constant 600 : index
    %c0_83 = arith.constant 0 : index
    %242 = vector.load %arg2[%c600, %c0_83] : memref<1128x128xf32, #tpu.memory_space<vmem>>, vector<1x100xf32>
    %243 = vector.broadcast %242 : vector<1x100xf32> to vector<8x100xf32>
    %244 = arith.addf %241, %243 : vector<8x100xf32>
    %cst_84 = arith.constant 0.000000e+00 : f32
    %245 = vector.broadcast %cst_84 : f32 to vector<8x100xf32>
    %246 = arith.maximumf %244, %245 : vector<8x100xf32>
    %c608 = arith.constant 608 : index
    %c0_85 = arith.constant 0 : index
    %247 = vector.load %arg2[%c608, %c0_85] : memref<1128x128xf32, #tpu.memory_space<vmem>>, vector<100x32xf32>
    %cst_86 = arith.constant dense<0.000000e+00> : vector<8x32xf32>
    %248 = tpu.matmul %246, %247, %cst_86 {dimension_numbers = #tpu.dot_dimension_numbers<[1], [0], [0], [1], [0, 0, 1, 1], [], []>} : vector<8x100xf32>, vector<100x32xf32>, vector<8x32xf32> -> vector<8x32xf32>
    %c712 = arith.constant 712 : index
    %c0_87 = arith.constant 0 : index
    %249 = vector.load %arg2[%c712, %c0_87] : memref<1128x128xf32, #tpu.memory_space<vmem>>, vector<1x32xf32>
    %250 = vector.broadcast %249 : vector<1x32xf32> to vector<8x32xf32>
    %251 = arith.addf %248, %250 : vector<8x32xf32>
    %252 = vector.extract_strided_slice %251 {offsets = [0, 0], sizes = [8, 16], strides = [1, 1]} : vector<8x32xf32> to vector<8x16xf32>
    %c976 = arith.constant 976 : index
    %c0_88 = arith.constant 0 : index
    %253 = vector.load %arg2[%c976, %c0_88] : memref<1128x128xf32, #tpu.memory_space<vmem>>, vector<16x50xf32>
    %cst_89 = arith.constant dense<0.000000e+00> : vector<8x50xf32>
    %254 = tpu.matmul %252, %253, %cst_89 {dimension_numbers = #tpu.dot_dimension_numbers<[1], [0], [0], [1], [0, 0, 1, 1], [], []>} : vector<8x16xf32>, vector<16x50xf32>, vector<8x50xf32> -> vector<8x50xf32>
    %c992 = arith.constant 992 : index
    %c0_90 = arith.constant 0 : index
    %255 = vector.load %arg2[%c992, %c0_90] : memref<1128x128xf32, #tpu.memory_space<vmem>>, vector<1x50xf32>
    %256 = vector.broadcast %255 : vector<1x50xf32> to vector<8x50xf32>
    %257 = arith.addf %254, %256 : vector<8x50xf32>
    %cst_91 = arith.constant 0.000000e+00 : f32
    %258 = vector.broadcast %cst_91 : f32 to vector<8x50xf32>
    %259 = arith.maximumf %257, %258 : vector<8x50xf32>
    %c1000 = arith.constant 1000 : index
    %c0_92 = arith.constant 0 : index
    %260 = vector.load %arg2[%c1000, %c0_92] : memref<1128x128xf32, #tpu.memory_space<vmem>>, vector<50x50xf32>
    %cst_93 = arith.constant dense<0.000000e+00> : vector<8x50xf32>
    %261 = tpu.matmul %259, %260, %cst_93 {dimension_numbers = #tpu.dot_dimension_numbers<[1], [0], [0], [1], [0, 0, 1, 1], [], []>} : vector<8x50xf32>, vector<50x50xf32>, vector<8x50xf32> -> vector<8x50xf32>
    %c1056 = arith.constant 1056 : index
    %c0_94 = arith.constant 0 : index
    %262 = vector.load %arg2[%c1056, %c0_94] : memref<1128x128xf32, #tpu.memory_space<vmem>>, vector<1x50xf32>
    %263 = vector.broadcast %262 : vector<1x50xf32> to vector<8x50xf32>
    %264 = arith.addf %261, %263 : vector<8x50xf32>
    %cst_95 = arith.constant 0.000000e+00 : f32
    %265 = vector.broadcast %cst_95 : f32 to vector<8x50xf32>
    %266 = arith.maximumf %264, %265 : vector<8x50xf32>
    %c1064 = arith.constant 1064 : index
    %c0_96 = arith.constant 0 : index
    %267 = vector.load %arg2[%c1064, %c0_96] : memref<1128x128xf32, #tpu.memory_space<vmem>>, vector<50x1xf32>
    %cst_97 = arith.constant dense<0.000000e+00> : vector<8x1xf32>
    %268 = tpu.matmul %266, %267, %cst_97 {dimension_numbers = #tpu.dot_dimension_numbers<[1], [0], [0], [1], [0, 0, 1, 1], [], []>} : vector<8x50xf32>, vector<50x1xf32>, vector<8x1xf32> -> vector<8x1xf32>
    %c1120 = arith.constant 1120 : index
    %c0_98 = arith.constant 0 : index
    %269 = vector.load %arg2[%c1120, %c0_98] : memref<1128x128xf32, #tpu.memory_space<vmem>>, vector<1x1xf32>
    %270 = vector.broadcast %269 : vector<1x1xf32> to vector<8x1xf32>
    %271 = arith.addf %268, %270 : vector<8x1xf32>
    %272 = tpu.iota {dimensions = array<i32: 1>} : vector<8x32xi32>
    %c16_i32 = arith.constant 16 : i32
    %273 = vector.broadcast %c16_i32 : i32 to vector<8x32xi32>
    %274 = arith.cmpi sge, %272, %273 : vector<8x32xi32>
    %275 = math.absf %251 : vector<8x32xf32>
    %276 = arith.select %274, %275, %251 : vector<8x32xi1>, vector<8x32xf32>
    %277 = tpu.concatenate %276, %271 in 1 : vector<8x32xf32>, vector<8x1xf32> -> vector<8x33xf32>
    %c0_99 = arith.constant 0 : index
    %c0_100 = arith.constant 0 : index
    %278 = vector.load %arg4[%c0_99, %c0_100] : memref<8x33xf32, #tpu.memory_space<vmem>>, vector<8x33xf32>
    tpu.vector_store %arg4[%c0_99, %c0_100], %277 {strides = array<i32>} : memref<8x33xf32, #tpu.memory_space<vmem>>, vector<8x33xf32>,
    %c720 = arith.constant 720 : index
    %c0_101 = arith.constant 0 : index
    %279 = vector.load %arg2[%c720, %c0_101] : memref<1128x128xf32, #tpu.memory_space<vmem>>, vector<16x64xf32>
    %c736 = arith.constant 736 : index
    %c0_102 = arith.constant 0 : index
    %280 = vector.load %arg2[%c736, %c0_102] : memref<1128x128xf32, #tpu.memory_space<vmem>>, vector<1x64xf32>
    %281 = vector.shape_cast %280 : vector<1x64xf32> to vector<1x64xf32>
    %282 = vector.broadcast %281 : vector<1x64xf32> to vector<8x64xf32>
    %c744 = arith.constant 744 : index
    %c0_103 = arith.constant 0 : index
    %283 = vector.load %arg2[%c744, %c0_103] : memref<1128x128xf32, #tpu.memory_space<vmem>>, vector<64x64xf32>
    %c808 = arith.constant 808 : index
    %c0_104 = arith.constant 0 : index
    %284 = vector.load %arg2[%c808, %c0_104] : memref<1128x128xf32, #tpu.memory_space<vmem>>, vector<1x64xf32>
    %285 = vector.shape_cast %284 : vector<1x64xf32> to vector<1x64xf32>
    %286 = vector.broadcast %285 : vector<1x64xf32> to vector<8x64xf32>
    %c816 = arith.constant 816 : index
    %c0_105 = arith.constant 0 : index
    %287 = vector.load %arg2[%c816, %c0_105] : memref<1128x128xf32, #tpu.memory_space<vmem>>, vector<64x16xf32>
    %c880 = arith.constant 880 : index
    %c0_106 = arith.constant 0 : index
    %288 = vector.load %arg2[%c880, %c0_106] : memref<1128x128xf32, #tpu.memory_space<vmem>>, vector<1x16xf32>
    %289 = vector.shape_cast %288 : vector<1x16xf32> to vector<1x16xf32>
    %290 = vector.broadcast %289 : vector<1x16xf32> to vector<8x16xf32>
    %cst_107 = arith.constant dense<0.000000e+00> : vector<8x64xf32>
    %291 = tpu.matmul %252, %279, %cst_107 {dimension_numbers = #tpu.dot_dimension_numbers<[1], [0], [0], [1], [0, 0, 1, 1], [], []>} : vector<8x16xf32>, vector<16x64xf32>, vector<8x64xf32> -> vector<8x64xf32>
    %292 = arith.addf %291, %282 : vector<8x64xf32>
    %cst_108 = arith.constant 0.000000e+00 : f32
    %293 = vector.broadcast %cst_108 : f32 to vector<8x64xf32>
    %294 = arith.maximumf %292, %293 : vector<8x64xf32>
    %cst_109 = arith.constant dense<0.000000e+00> : vector<8x64xf32>
    %295 = tpu.matmul %294, %283, %cst_109 {dimension_numbers = #tpu.dot_dimension_numbers<[1], [0], [0], [1], [0, 0, 1, 1], [], []>} : vector<8x64xf32>, vector<64x64xf32>, vector<8x64xf32> -> vector<8x64xf32>
    %296 = arith.addf %295, %286 : vector<8x64xf32>
    %cst_110 = arith.constant 0.000000e+00 : f32
    %297 = vector.broadcast %cst_110 : f32 to vector<8x64xf32>
    %298 = arith.maximumf %296, %297 : vector<8x64xf32>
    %c0_111 = arith.constant 0 : index
    %299 = memref.load %arg3[%c0_111] : memref<4xf32, #tpu.memory_space<smem>>
    %cst_112 = arith.constant dense<0.000000e+00> : vector<8x16xf32>
    %300 = tpu.matmul %298, %287, %cst_112 {dimension_numbers = #tpu.dot_dimension_numbers<[1], [0], [0], [1], [0, 0, 1, 1], [], []>} : vector<8x64xf32>, vector<64x16xf32>, vector<8x16xf32> -> vector<8x16xf32>
    %301 = arith.addf %300, %290 : vector<8x16xf32>
    %302 = vector.broadcast %299 : f32 to vector<8x16xf32>
    %303 = arith.mulf %302, %301 : vector<8x16xf32>
    %304 = arith.addf %252, %303 : vector<8x16xf32>
    %cst_113 = arith.constant dense<0.000000e+00> : vector<8x64xf32>
    %305 = tpu.matmul %304, %279, %cst_113 {dimension_numbers = #tpu.dot_dimension_numbers<[1], [0], [0], [1], [0, 0, 1, 1], [], []>} : vector<8x16xf32>, vector<16x64xf32>, vector<8x64xf32> -> vector<8x64xf32>
    %306 = arith.addf %305, %282 : vector<8x64xf32>
    %cst_114 = arith.constant 0.000000e+00 : f32
    %307 = vector.broadcast %cst_114 : f32 to vector<8x64xf32>
    %308 = arith.maximumf %306, %307 : vector<8x64xf32>
    %cst_115 = arith.constant dense<0.000000e+00> : vector<8x64xf32>
    %309 = tpu.matmul %308, %283, %cst_115 {dimension_numbers = #tpu.dot_dimension_numbers<[1], [0], [0], [1], [0, 0, 1, 1], [], []>} : vector<8x64xf32>, vector<64x64xf32>, vector<8x64xf32> -> vector<8x64xf32>
    %310 = arith.addf %309, %286 : vector<8x64xf32>
    %cst_116 = arith.constant 0.000000e+00 : f32
    %311 = vector.broadcast %cst_116 : f32 to vector<8x64xf32>
    %312 = arith.maximumf %310, %311 : vector<8x64xf32>
    %c1 = arith.constant 1 : index
    %313 = memref.load %arg3[%c1] : memref<4xf32, #tpu.memory_space<smem>>
    %cst_117 = arith.constant dense<0.000000e+00> : vector<8x16xf32>
    %314 = tpu.matmul %312, %287, %cst_117 {dimension_numbers = #tpu.dot_dimension_numbers<[1], [0], [0], [1], [0, 0, 1, 1], [], []>} : vector<8x64xf32>, vector<64x16xf32>, vector<8x16xf32> -> vector<8x16xf32>
    %315 = arith.addf %314, %290 : vector<8x16xf32>
    %316 = vector.broadcast %313 : f32 to vector<8x16xf32>
    %317 = arith.mulf %316, %315 : vector<8x16xf32>
    %318 = arith.addf %304, %317 : vector<8x16xf32>
    %cst_118 = arith.constant dense<0.000000e+00> : vector<8x64xf32>
    %319 = tpu.matmul %318, %279, %cst_118 {dimension_numbers = #tpu.dot_dimension_numbers<[1], [0], [0], [1], [0, 0, 1, 1], [], []>} : vector<8x16xf32>, vector<16x64xf32>, vector<8x64xf32> -> vector<8x64xf32>
    %320 = arith.addf %319, %282 : vector<8x64xf32>
    %cst_119 = arith.constant 0.000000e+00 : f32
    %321 = vector.broadcast %cst_119 : f32 to vector<8x64xf32>
    %322 = arith.maximumf %320, %321 : vector<8x64xf32>
    %cst_120 = arith.constant dense<0.000000e+00> : vector<8x64xf32>
    %323 = tpu.matmul %322, %283, %cst_120 {dimension_numbers = #tpu.dot_dimension_numbers<[1], [0], [0], [1], [0, 0, 1, 1], [], []>} : vector<8x64xf32>, vector<64x64xf32>, vector<8x64xf32> -> vector<8x64xf32>
    %324 = arith.addf %323, %286 : vector<8x64xf32>
    %cst_121 = arith.constant 0.000000e+00 : f32
    %325 = vector.broadcast %cst_121 : f32 to vector<8x64xf32>
    %326 = arith.maximumf %324, %325 : vector<8x64xf32>
    %c2 = arith.constant 2 : index
    %327 = memref.load %arg3[%c2] : memref<4xf32, #tpu.memory_space<smem>>
    %cst_122 = arith.constant dense<0.000000e+00> : vector<8x16xf32>
    %328 = tpu.matmul %326, %287, %cst_122 {dimension_numbers = #tpu.dot_dimension_numbers<[1], [0], [0], [1], [0, 0, 1, 1], [], []>} : vector<8x64xf32>, vector<64x16xf32>, vector<8x16xf32> -> vector<8x16xf32>
    %329 = arith.addf %328, %290 : vector<8x16xf32>
    %330 = vector.broadcast %327 : f32 to vector<8x16xf32>
    %331 = arith.mulf %330, %329 : vector<8x16xf32>
    %332 = arith.addf %318, %331 : vector<8x16xf32>
    %cst_123 = arith.constant dense<0.000000e+00> : vector<8x64xf32>
    %333 = tpu.matmul %332, %279, %cst_123 {dimension_numbers = #tpu.dot_dimension_numbers<[1], [0], [0], [1], [0, 0, 1, 1], [], []>} : vector<8x16xf32>, vector<16x64xf32>, vector<8x64xf32> -> vector<8x64xf32>
    %334 = arith.addf %333, %282 : vector<8x64xf32>
    %cst_124 = arith.constant 0.000000e+00 : f32
    %335 = vector.broadcast %cst_124 : f32 to vector<8x64xf32>
    %336 = arith.maximumf %334, %335 : vector<8x64xf32>
    %cst_125 = arith.constant dense<0.000000e+00> : vector<8x64xf32>
    %337 = tpu.matmul %336, %283, %cst_125 {dimension_numbers = #tpu.dot_dimension_numbers<[1], [0], [0], [1], [0, 0, 1, 1], [], []>} : vector<8x64xf32>, vector<64x64xf32>, vector<8x64xf32> -> vector<8x64xf32>
    %338 = arith.addf %337, %286 : vector<8x64xf32>
    %cst_126 = arith.constant 0.000000e+00 : f32
    %339 = vector.broadcast %cst_126 : f32 to vector<8x64xf32>
    %340 = arith.maximumf %338, %339 : vector<8x64xf32>
    %c3 = arith.constant 3 : index
    %341 = memref.load %arg3[%c3] : memref<4xf32, #tpu.memory_space<smem>>
    %cst_127 = arith.constant dense<0.000000e+00> : vector<8x16xf32>
    %342 = tpu.matmul %340, %287, %cst_127 {dimension_numbers = #tpu.dot_dimension_numbers<[1], [0], [0], [1], [0, 0, 1, 1], [], []>} : vector<8x64xf32>, vector<64x16xf32>, vector<8x16xf32> -> vector<8x16xf32>
    %343 = arith.addf %342, %290 : vector<8x16xf32>
    %344 = vector.broadcast %341 : f32 to vector<8x16xf32>
    %345 = arith.mulf %344, %343 : vector<8x16xf32>
    %346 = arith.addf %332, %345 : vector<8x16xf32>
    %347 = tpu.concatenate %252, %304, %318, %332, %346 in 1 : vector<8x16xf32>, vector<8x16xf32>, vector<8x16xf32>, vector<8x16xf32>, vector<8x16xf32> -> vector<8x80xf32>
    %c0_128 = arith.constant 0 : index
    %c0_129 = arith.constant 0 : index
    %348 = vector.load %arg5[%c0_128, %c0_129] : memref<8x80xf32, #tpu.memory_space<vmem>>, vector<8x80xf32>
    tpu.vector_store %arg5[%c0_128, %c0_129], %347 {strides = array<i32>} : memref<8x80xf32, #tpu.memory_space<vmem>>, vector<8x80xf32>,
    %c888 = arith.constant 888 : index
    %c0_130 = arith.constant 0 : index
    %349 = vector.load %arg2[%c888, %c0_130] : memref<1128x128xf32, #tpu.memory_space<vmem>>, vector<80x80xf32>
    %cst_131 = arith.constant dense<0.000000e+00> : vector<8x80xf32>
    %350 = tpu.matmul %347, %349, %cst_131 {dimension_numbers = #tpu.dot_dimension_numbers<[1], [0], [0], [1], [0, 0, 1, 1], [], []>} : vector<8x80xf32>, vector<80x80xf32>, vector<8x80xf32> -> vector<8x80xf32>
    %c968 = arith.constant 968 : index
    %c0_132 = arith.constant 0 : index
    %351 = vector.load %arg2[%c968, %c0_132] : memref<1128x128xf32, #tpu.memory_space<vmem>>, vector<1x80xf32>
    %352 = vector.broadcast %351 : vector<1x80xf32> to vector<8x80xf32>
    %353 = arith.addf %350, %352 : vector<8x80xf32>
    %c0_133 = arith.constant 0 : index
    %c0_134 = arith.constant 0 : index
    %354 = vector.load %arg6[%c0_133, %c0_134] : memref<8x80xf32, #tpu.memory_space<vmem>>, vector<8x80xf32>
    tpu.vector_store %arg6[%c0_133, %c0_134], %353 {strides = array<i32>} : memref<8x80xf32, #tpu.memory_space<vmem>>, vector<8x80xf32>,
    return
  }
}

</mosaic_0001>

<bundles_post_ra>
// kernel: baseline_rnn_forward.1
= control target key start
LH: loop header
LB: loop body
LE: loop exit
PB: predicated region body
PF: predicated region fallthrough
CT: control target
= control target key end

     0   :  { %12 = vsyncpa [#allocation3], 0  ;;  %s7975_s0 = inlined_call_operand.vmem [shape: f32[48,16], index: 0, kind: input, shape index: {}]   ;;  %s7976_s1 = inlined_call_operand.vmem [shape: f32[8,7], index: 1, kind: input, shape index: {}]   ;;  %s7977_s2 = inlined_call_operand.vmem [shape: f32[1128,128], index: 2, kind: input, shape index: {}]   ;;  %s7978_s3 = inlined_call_operand.vmem [shape: f32[4], index: 3, kind: input, shape index: {}]   ;;  %s7979_s4 = inlined_call_operand.vmem [shape: f32[8,33], index: 4, kind: output, shape index: {0}]   ;;  %s7980_s5 = inlined_call_operand.vmem [shape: f32[8,80], index: 5, kind: output, shape index: {1}]   ;;  %s7981_s6 = inlined_call_operand.vmem [shape: f32[8,80], index: 6, kind: output, shape index: {2}]  }
   0x1   :  { %s25_s23 = sshll.u32 %s7978_s3, 4  ;;  %s26_s23 = int_to_ptr.vmem [resolvable:$true] %s25_s23 }
   0x2   :  { %s6644_s24 = scalar_lea.vmem %s26_s23, 16  ;;  %p6649_p1 = scmp.lt.s32.totalorder %s26_s23, %s26_s23 }
   0x3   :  { %p6645_p0 = scmp.ne.s32.totalorder %s26_s23, %s6644_s24  ;;  %p6650_p2 = scmp.lt.s32.totalorder %s6644_s24, %s6644_s24 }
   0x5   :  { %p6651_p3 = por %p6650_p2, %p6649_p1 }
   0x7   :  { %p6652_p4 = pnand %p6651_p3, %p6645_p0 }
   0x9   :  { %6655 = shalt.err (!%p6652_p4)
}
   0xa   :  { %s6658_s25 = smov [#allocation2]  }
   0xb   :  { %28 = dma.vmem_to_smem %s26_s23, 16, %s6658_s25, [#allocation3]  }
   0xc   :  { %6656 = dma.done.wait [#allocation3], 16  }
   0xd   :  { %6657 = vsyncadd [#allocation3], 4294967280 }
   0xe   :  { %32 = sfence }
   0xf   :  { %v34_v0 = vld [vmem:[%s7977_s2] sm:$0x7f]  ;;  %vm44_vm0 = vcmask 1046528   ;;  %v6659_v2 = vmov 0.0   ;;  %vm6660_vm1 = vmmov 0   ;;  %vm40_vm2 = vcmask 56320  }
  0x10   :  { %v33_v1 = vld [vmem:[%s7976_s1] sm:$0xff]  ;;  %4813 = vmatprep.subr.mxu0 %v6659_v2  ;;  %4815 = vmatprep.mubr.msk.f32.mxu0 %vm6660_vm1, %v6659_v2  ;;  %v125_v3 = vld [vmem:[%s7977_s2 + $0x50] sm:$0xff]  ;;  %v126_v4 = vld [vmem:[%s7977_s2 + $0x58] sm:$0xff]  ;;  %vm132_vm3 = vcmask 130048   ;;  %v6661_v11 = vmov 0.0|0.0   ;;  %vm422_vm4 = vcmask 523264  }
  0x11   :  { %v119_v5 = vld [vmem:[%s7975_s0] sm:$0xff]  ;;  %4814 = vmatpush3.msk.msra.mxu0 %vm44_vm0, %v34_v0  ;;  %v5898_v6 = vpack.c.bf16 %v126_v4, %v125_v3  ;;  %v348_v7 = vld [vmem:[%s7977_s2 + $0x10] sm:$0xff]  ;;  %v349_v8 = vld [vmem:[%s7977_s2 + $0x18] sm:$0xff]  ;;  %vm2812_vm6 = vcmask 1043456   ;;  %vm2808_vm7 = vcmask 818176   ;;  %vm2983_vm8 = vcmask 1041408  }
  0x12   :  { %4822 = vmatprep.mubr.msk.f32.mxu1 %vm132_vm3, %v119_v5  ;;  %4816 = vmatmul.mubr.msk.f32.vlgmr.msra.gmra.mrb[0].mxu0 %vm40_vm2, %v33_v1  ;;  %v120_v9 = vld [vmem:[%s7975_s0 + $0x8] sm:$0xff]  ;;  %v6733_v10 = vpack.c.bf16 %v349_v8, %v348_v7  ;;  %v350_v12 = vld [vmem:[%s7977_s2 + $0x20] sm:$0xff]  ;;  %v121_v14 = vld [vmem:[%s7975_s0 + $0x10] sm:$0xff]  ;;  %vm2979_vm9 = vcmask 408576   ;;  %s3335_s10 = sld [smem:[#allocation2]]  ;;  %s6662_s11 = smov 16  }
  0x13   :  { %5899 = vmatprep.subr.bf16.mxu1 %v5898_v6  ;;  %4835 = vmatprep.mubr.msk.f32.mxu0 %vm132_vm3, %v119_v5  ;;  %v351_v13 = vld [vmem:[%s7977_s2 + $0x28] sm:$0xff]  ;;  %v122_v16 = vld [vmem:[%s7975_s0 + $0x18] sm:$0xff]  ;;  %v352_v17 = vld [vmem:[%s7977_s2 + $0x30] sm:$0xff]  ;;  %s4280_s12 = sld [smem:[#allocation2 + $0x1]]  ;;  %s6663_s15 = smov 32   ;;  %vm3153_vm10 = vcmask 261120  }
  0x14   :  { %5901 = vmatpush3.bf16.msra.mxu1 %v5898_v6  ;;  %v6747_v15 = vpack.c.bf16 %v351_v13, %v350_v12  ;;  %v353_v18 = vld [vmem:[%s7977_s2 + $0x38] sm:$0xff]  ;;  %v123_v19 = vld [vmem:[%s7975_s0 + $0x20] sm:$0xff]  ;;  %v124_v21 = vld [vmem:[%s7975_s0 + $0x28] sm:$0xff]  ;;  %vm3155_vm12 = vcmask 269312   ;;  %s6664_s18 = smov 48   ;;  %s6665_s13 = smov 64  }
  0x15   :  { %5906 = vmatprep.subr.bf16.mxu1 %v6661_v11  ;;  %v6765_v20 = vpack.c.bf16 %v353_v18, %v352_v17  ;;  %v354_v22 = vld [vmem:[%s7977_s2 + $0x40] sm:$0xff]  ;;  %v355_v23 = vld [vmem:[%s7977_s2 + $0x48] sm:$0xff]  ;;  %v246_v25 = vld [vmem:[%s7977_s2 + $0x1b8] sm:$0xff]  ;;  %vm4102_vm13 = vcmask 392192   ;;  %vm4105_vm14 = vcmask 654336  }
  0x16   :  { %v6781_v24 = vpack.c.bf16 %v355_v23, %v354_v22  ;;  %v247_v26 = vld [vmem:[%s7977_s2 + $0x1c0] sm:$0xff]  ;;  %v356_v28 = vld [vmem:[%s7977_s2 + $0x68] sm:$0xff]  ;;  %v357_v29 = vld [vmem:[%s7977_s2 + $0x70] sm:$0xff] }
  0x17   :  { %4823 = vmatmul.mubr.msk.f32.vlgmr.msra.gmra.mrb[0].mxu1 %vm132_vm3, %v120_v9  ;;  %v5902_v27 = vpack.c.bf16 %v247_v26, %v246_v25  ;;  %v6799_v30 = vpack.c.bf16 %v357_v29, %v356_v28  ;;  %v358_v31 = vld [vmem:[%s7977_s2 + $0x78] sm:$0xff]  ;;  %v359_v32 = vld [vmem:[%s7977_s2 + $0x80] sm:$0xff]  ;;  %v360_v34 = vld [vmem:[%s7977_s2 + $0x88] sm:$0xff] }
  0x18   :  { %5908 = vmatpush3.bf16.msra.mxu1 %v6733_v10  ;;  %4825 = vmatprep.mubr.msk.f32.mxu1 %vm132_vm3, %v121_v14  ;;  %v6810_v33 = vpack.c.bf16 %v359_v32, %v358_v31  ;;  %v361_v35 = vld [vmem:[%s7977_s2 + $0x90] sm:$0xff]  ;;  %v362_v37 = vld [vmem:[%s7977_s2 + $0x98] sm:$0xff]  ;;  %v363_v38 = vld [vmem:[%s7977_s2 + $0xa0] sm:$0xff] }
  0x19   :  { %5909 = vmatprep.subr.bf16.mxu1 %v6661_v11  ;;  %5903 = vmatprep.subr.bf16.mxu0 %v5902_v27  ;;  %v6822_v36 = vpack.c.bf16 %v361_v35, %v360_v34  ;;  %v6834_v39 = vpack.c.bf16 %v363_v38, %v362_v37  ;;  %v364_v40 = vld [vmem:[%s7977_s2 + $0xa8] sm:$0xff]  ;;  %v365_v41 = vld [vmem:[%s7977_s2 + $0xb0] sm:$0xff]  ;;  %v366_v43 = vld [vmem:[%s7977_s2 + $0xb8] sm:$0xff] }
  0x1a   :  { %5905 = vmatpush3.bf16.msra.mxu0 %v5902_v27  ;;  %v6846_v42 = vpack.c.bf16 %v365_v41, %v364_v40  ;;  %v367_v44 = vld [vmem:[%s7977_s2 + $0xc0] sm:$0xff]  ;;  %v368_v46 = vld [vmem:[%s7977_s2 + $0xc8] sm:$0xff]  ;;  %v369_v47 = vld [vmem:[%s7977_s2 + $0xd0] sm:$0xff] }
  0x1b   :  { %4826 = vmatmul.mubr.msk.f32.gmra.mrb[2].mxu1 %vm132_vm3, %v122_v16  ;;  %5918 = vmatprep.subr.bf16.mxu0 %v6661_v11  ;;  %v6856_v45 = vpack.c.bf16 %v367_v44, %v366_v43  ;;  %v6867_v48 = vpack.c.bf16 %v369_v47, %v368_v46  ;;  %v4209_v49 = vld [vmem:[%s7977_s2 + $0x8] ss:$0 sm:$0xff]  ;;  %v372_v50 = vld [vmem:[%s7977_s2 + $0xf0] sm:$0xff]  ;;  %v373_v51 = vld [vmem:[%s7977_s2 + $0xf8] sm:$0xff] }
  0x1c   :  { %5911 = vmatpush3.bf16.msra.mxu1 %v6747_v15  ;;  %4828 = vmatprep.mubr.msk.f32.mxu1 %vm132_vm3, %v123_v19  ;;  %v6880_v55 = vpack.c.bf16 %v373_v51, %v372_v50  ;;  %v374_v57 = vld [vmem:[%s7977_s2 + $0x100] sm:$0xff]  ;;  %v375_v58 = vld [vmem:[%s7977_s2 + $0x108] sm:$0xff]  ;;  %v376_v62 = vld [vmem:[%s7977_s2 + $0x110] sm:$0xff] }
  0x1d   :  { %5912 = vmatprep.subr.bf16.mxu1 %v6661_v11  ;;  %4836 = vmatmul.mubr.msk.f32.vlgmr.msra.gmra.mrb[2].mxu0 %vm132_vm3, %v120_v9  ;;  %v6895_v60 = vpack.c.bf16 %v375_v58, %v374_v57  ;;  %v377_v63 = vld [vmem:[%s7977_s2 + $0x118] sm:$0xff]  ;;  %v378_v4 = vld [vmem:[%s7977_s2 + $0x120] sm:$0xff]  ;;  %v379_v5 = vld [vmem:[%s7977_s2 + $0x128] sm:$0xff] }
  0x1e   :  { %5920 = vmatpush3.bf16.msra.mxu0 %v6799_v30  ;;  %4838 = vmatprep.mubr.msk.f32.mxu0 %vm132_vm3, %v121_v14  ;;  %v6909_v1 = vpack.c.bf16 %v377_v63, %v376_v62  ;;  %v6921_v6 = vpack.c.bf16 %v379_v5, %v378_v4  ;;  %v380_v7 = vld [vmem:[%s7977_s2 + $0x130] sm:$0xff]  ;;  %v381_v8 = vld [vmem:[%s7977_s2 + $0x138] sm:$0xff]  ;;  %v382_v12 = vld [vmem:[%s7977_s2 + $0x140] sm:$0xff] }
  0x1f   :  { %4829 = vmatmul.mubr.msk.f32.gmra.mrb[4].mxu1 %vm132_vm3, %v124_v21  ;;  %5921 = vmatprep.subr.bf16.mxu0 %v6661_v11  ;;  %v6931_v9 = vpack.c.bf16 %v381_v8, %v380_v7  ;;  %v383_v13 = vld [vmem:[%s7977_s2 + $0x148] sm:$0xff]  ;;  %v385_v17 = vld [vmem:[%s7977_s2 + $0x158] sm:$0xff]  ;;  %v371_v23 = vld [vmem:[%s7977_s2 + $0xe0] sm:$0xff] }
  0x20   :  { %5914 = vmatpush3.bf16.msra.mxu1 %v6765_v20  ;;  %4860 = vmatprep.mubr.msk.f32.mxu1 %vm6660_vm1, %v6659_v2  ;;  %v6941_v14 = vpack.c.bf16 %v383_v13, %v382_v12  ;;  %v370_v22 = vld [vmem:[%s7977_s2 + $0xd8] sm:$0xff]  ;;  %v386_v25 = vld [vmem:[%s7977_s2 + $0x160] sm:$0xff]  ;;  %v387_v27 = vld [vmem:[%s7977_s2 + $0x168] sm:$0xff] }
  0x21   :  { %5915 = vmatprep.subr.bf16.mxu1 %v6661_v11  ;;  %4839 = vmatmul.mubr.msk.f32.gmra.mrb[4].mxu0 %vm132_vm3, %v122_v16  ;;  %v384_v16 = vld [vmem:[%s7977_s2 + $0x150] sm:$0xff]  ;;  %v6969_v26 = vpack.c.bf16 %v371_v23, %v370_v22  ;;  %v6974_v28 = vpack.c.bf16 %v387_v27, %v386_v25  ;;  %v6983_v29 = vld [vmem:[%s7977_s2 + $0x1c8] ss:$0 sm:$0xff]  ;;  %v7005_v47 = vld [vmem:[%s7977_s2 + $0x60] ss:$0 sm:$0xff] }
  0x22   :  { %5923 = vmatpush3.bf16.msra.mxu0 %v6810_v33  ;;  %4841 = vmatprep.mubr.msk.f32.mxu0 %vm132_vm3, %v123_v19  ;;  %v6951_v18 = vpack.c.bf16 %v385_v17, %v384_v16  ;;  %v389_v57 = vld [vmem:[%s7977_s2 + $0x180] sm:$0xff]  ;;  %v391_v62 = vld [vmem:[%s7977_s2 + $0x190] sm:$0xff]  ;;  %v392_v4 = vld [vmem:[%s7977_s2 + $0x198] sm:$0xff] }
  0x23   :  { %5924 = vmatprep.subr.bf16.mxu0 %v6661_v11  ;;  %v393_v5 = vld [vmem:[%s7977_s2 + $0x1a0] sm:$0xff]  ;;  %v394_v8 = vld [vmem:[%s7977_s2 + $0x1a8] sm:$0xff]  ;;  %v395_v12 = vld [vmem:[%s7977_s2 + $0x1b0] sm:$0xff] }
  0x24   :  { %5917 = vmatpush3.bf16.msra.mxu1 %v6781_v24  ;;  %v7037_v7 = vpack.c.bf16 %v393_v5, %v392_v4  ;;  %v7047_v13 = vpack.c.bf16 %v395_v12, %v394_v8  ;;  %v396_v16 = vld [vmem:[%s7977_s2 + $0x1d0] sm:$0xff]  ;;  %v397_v17 = vld [vmem:[%s7977_s2 + $0x1d8] sm:$0xff]  ;;  %v398_v22 = vld [vmem:[%s7977_s2 + $0x1e0] sm:$0xff] }
  0x25   :  { %5942 = vmatprep.subr.bf16.mxu1 %v6661_v11  ;;  %4842 = vmatmul.mubr.msk.f32.gmra.mrb[6].mxu0 %vm132_vm3, %v124_v21  ;;  %v7061_v23 = vpack.c.bf16 %v397_v17, %v396_v16  ;;  %v399_v25 = vld [vmem:[%s7977_s2 + $0x1e8] sm:$0xff]  ;;  %v402_v4 = vld [vmem:[%s7977_s2 + $0x200] sm:$0xff] }
  0x26   :  { %5926 = vmatpush3.bf16.msra.mxu0 %v6822_v36  ;;  %4895 = vmatprep.mubr.msk.f32.mxu0 %vm6660_vm1, %v6659_v2  ;;  %v7067_v27 = vpack.c.bf16 %v399_v25, %v398_v22  ;;  %v403_v5 = vld [vmem:[%s7977_s2 + $0x208] sm:$0xff] }
  0x27   :  { %5927 = vmatprep.subr.bf16.mxu0 %v6661_v11  ;;  %v7106_v8 = vpack.c.bf16 %v403_v5, %v402_v4 }
  0x2a   :  { %5929 = vmatpush3.bf16.msra.mxu0 %v6834_v39 }
  0x2b   :  { %5930 = vmatprep.subr.bf16.mxu0 %v6661_v11 }
  0x2e   :  { %5932 = vmatpush3.bf16.msra.mxu0 %v6846_v42 }
  0x2f   :  { %5933 = vmatprep.subr.bf16.mxu0 %v6661_v11 }
  0x32   :  { %5935 = vmatpush3.bf16.msra.mxu0 %v6856_v45 }
  0x33   :  { %5936 = vmatprep.subr.bf16.mxu0 %v6661_v11 }
  0x36   :  { %5938 = vmatpush3.bf16.msra.mxu0 %v6867_v48 }
  0x37   :  { %5939 = vmatprep.subr.bf16.mxu0 %v6661_v11 }
  0x3a   :  { %5941 = vmatpush3.bf16.msra.mxu0 %v6969_v26 }
  0x3b   :  { %5966 = vmatprep.subr.bf16.mxu0 %v6661_v11 }
  0xe5   :  { %v114_v52 = vpop.f32.mrb[0].mxu0 }
  0xe6   :  { %v115_v53 = vadd.f32 %v4209_v49, %v114_v52  ;;  %v4817_v54 = vpop.f32.mrb[1].mxu0 }
  0xe7   :  { %v388_v54 = vld [vmem:[%s7977_s2 + $0x178] sm:$0xff] }
  0xe8   :  { %v6882_v56 = vmax.f32 %v115_v53, 0.0  ;;  %v7018_v58 = vpack.c.bf16 %v389_v57, %v388_v54 }
  0xea   :  { %4861 = vmatmul.mubr.msk.f32.vlgmr.msra.gmra.mrb[6].mxu1 %vm422_vm4, %v6882_v56  ;;  %v6892_v59 = vpop.f32.mrb[0].mxu1 }
  0xeb   :  { %5944 = vmatpush3.bf16.msra.mxu1 %v6880_v55  ;;  %v217_v61 = vpop.f32.mrb[1].mxu1  ;;  %4930 = vmatprep.mubr.msk.f32.mxu1 %vm6660_vm1, %v6659_v2 }
  0xec   :  { %5945 = vmatprep.subr.bf16.mxu1 %v6661_v11  ;;  %v218_v49 = vadd.f32 %v7005_v47, %v217_v61  ;;  %v390_v61 = vld [vmem:[%s7977_s2 + $0x188] sm:$0xff] }
  0xed   :  { %v7028_v63 = vpack.c.bf16 %v391_v62, %v390_v61 }
  0xee   :  { %v6906_v0 = vpop.f32.mrb[2].mxu1 }
  0xef   :  { %5947 = vmatpush3.bf16.msra.mxu1 %v6895_v60  ;;  %v6911_v3 = vpop.f32.mrb[3].mxu1 }
  0xf0   :  { %5948 = vmatprep.subr.bf16.mxu1 %v6661_v11  ;;  %v4837_v31 = vpop.f32.mrb[2].mxu0 }
  0xf1   :  { %v6986_v32 = vadd.f32 %v4837_v31, %v6983_v29  ;;  %v6988_v34 = vpop.f32.mrb[3].mxu0  ;;  %v400_v31 = vld [vmem:[%s7977_s2 + $0x1f0] sm:$0xff] }
  0xf2   :  { %v6956_v19 = vpop.f32.mrb[4].mxu1  ;;  %v320_v12 = vadd.f32 %v6983_v29, %v6988_v34 }
  0xf3   :  { %5950 = vmatpush3.bf16.msra.mxu1 %v6909_v1  ;;  %v6958_v21 = vpop.f32.mrb[5].mxu1 }
  0xf4   :  { %5951 = vmatprep.subr.bf16.mxu1 %v6661_v11  ;;  %v4840_v35 = vpop.f32.mrb[4].mxu0 }
  0xf5   :  { %v6991_v37 = vadd.f32 %v4840_v35, %v6983_v29  ;;  %v329_v38 = vpop.f32.mrb[5].mxu0  ;;  %v401_v35 = vld [vmem:[%s7977_s2 + $0x1f8] sm:$0xff] }
  0xf6   :  { %v6994_v40 = vadd.f32 %v6983_v29, %v329_v38  ;;  %v7077_v38 = vpack.c.bf16 %v401_v35, %v400_v31 }
  0xf7   :  { %5953 = vmatpush3.bf16.msra.mxu1 %v6921_v6 }
  0xf8   :  { %5954 = vmatprep.subr.bf16.mxu1 %v6661_v11  ;;  %v4843_v41 = vpop.f32.mrb[6].mxu0 }
  0xf9   :  { %v6997_v43 = vadd.f32 %v4843_v41, %v6983_v29  ;;  %v339_v44 = vpop.f32.mrb[7].mxu0  ;;  %v7085_v41 = vld [vmem:[%s7977_s2 + $0x170] ss:$0 sm:$0xff] }
  0xfa   :  { %v7000_v46 = vadd.f32 %v6983_v29, %v339_v44  ;;  %v7134_v29 = vld [vmem:[%s7977_s2 + $0xe8] ss:$0 sm:$0xff] }
  0xfb   :  { %5956 = vmatpush3.bf16.msra.mxu1 %v6931_v9 }
  0xfc   :  { %5957 = vmatprep.subr.bf16.mxu1 %v6661_v11 }
  0xff   :  { %5959 = vmatpush3.bf16.msra.mxu1 %v6941_v14 }
 0x100   :  { %5960 = vmatprep.subr.bf16.mxu1 %v6661_v11 }
 0x103   :  { %5962 = vmatpush3.bf16.msra.mxu1 %v6951_v18 }
 0x104   :  { %5963 = vmatprep.subr.bf16.mxu1 %v6661_v11 }
 0x107   :  { %5965 = vmatpush3.bf16.msra.mxu1 %v6974_v28 }
 0x108   :  { %5978 = vmatprep.subr.bf16.mxu1 %v6661_v11 }
 0x1bd   :  { %v492_v50 = vpop.f32.mrb[6].mxu1 }
 0x1be   :  { %v493_v51 = vadd.f32 %v492_v50, %v218_v49  ;;  %v4862_v52 = vpop.f32.mrb[7].mxu1 }
 0x1c0   :  { %v496_v53 = vmax.f32 %v493_v51, 0.0 }
 0x1c2   :  { %4896 = vmatmul.mubr.f32.vlgmr.msra.gmra.mrb[8].mxu0 %v496_v53  ;;  %4931 = vmatmul.mubr.f32.vlgmr.msra.gmra.mrb[8].mxu1 %v496_v53 }
 0x1c3   :  { %4949 = vmatprep.mubr.msk.f32.mxu0 %vm6660_vm1, %v6659_v2  ;;  %4968 = vmatprep.mubr.msk.f32.mxu1 %vm6660_vm1, %v6659_v2 }
 0x1c4   :  { %5968 = vmatpush3.bf16.msra.mxu0 %v7018_v58  ;;  %5980 = vmatpush3.bf16.msra.mxu1 %v7061_v23 }
 0x1c5   :  { %5969 = vmatprep.subr.bf16.mxu0 %v6661_v11  ;;  %5981 = vmatprep.subr.bf16.mxu1 %v6661_v11 }
 0x1c8   :  { %5971 = vmatpush3.bf16.msra.mxu0 %v7028_v63  ;;  %5983 = vmatpush3.bf16.msra.mxu1 %v7067_v27 }
 0x1c9   :  { %5972 = vmatprep.subr.bf16.mxu0 %v6661_v11  ;;  %5984 = vmatprep.subr.bf16.mxu1 %v6661_v11 }
 0x1cc   :  { %5974 = vmatpush3.bf16.msra.mxu0 %v7037_v7  ;;  %5986 = vmatpush3.bf16.msra.mxu1 %v7077_v38 }
 0x1cd   :  { %5975 = vmatprep.subr.bf16.mxu0 %v6661_v11  ;;  %5987 = vmatprep.subr.bf16.mxu1 %v6661_v11 }
 0x1d0   :  { %5977 = vmatpush3.bf16.msra.mxu0 %v7047_v13  ;;  %5989 = vmatpush3.bf16.msra.mxu1 %v7106_v8 }
 0x1d1   :  { %5990 = vmatprep.subr.bf16.mxu0 %v6661_v11  ;;  %6002 = vmatprep.subr.bf16.mxu1 %v6661_v11 }
 0x295   :  { %v563_v44 = vpop.f32.mrb[8].mxu0  ;;  %v639_v49 = vpop.f32.mrb[8].mxu1 }
 0x296   :  { %v640_v50 = vadd.f32 %v7085_v41, %v639_v49  ;;  %v4897_v51 = vpop.f32.mrb[9].mxu0  ;;  %v4932_v52 = vpop.f32.mrb[9].mxu1  ;;  %v564_v34 = vadd.f32 %v7134_v29, %v563_v44 }
 0x297   :  { %v7140_v51 = vld [vmem:[%s7977_s2 + $0x210] ss:$0 sm:$0xff] }
 0x298   :  { %v4231_v53 = vmul.f32 -1.442695, %v640_v50  ;;  %v4230_v31 = vmul.f32 -1.442695, %v564_v34  ;;  %v419_v50 = vlaneseq }
 0x29a   :  { %6592 = vpow2.f32 %v4231_v53  ;;  %v7142_v52 = vand.u32 127, %v419_v50 }
 0x29c   :  { %vm421_vm5 = vcmp.ge.s32.totalorder %v7142_v52, 32  ;;  %vm3146_vm11 = vcmp.ge.s32.totalorder %v7142_v52, 16 }
 0x2a4   :  { %v6593_v54 = vpop.eup %6592 }
 0x2a5   :  { %v646_v57 = vadd.f32 1.0, %v6593_v54 }
 0x2a7   :  { %6594 = vrcp.f32 %v646_v57 }
 0x2a8   :  { %6596 = vpow2.f32 %v4230_v31 }
 0x2b1   :  { %v6595_v61 = vpop.eup %6594 }
 0x2b2   :  { %v649_v62 = vmul.f32 %v6595_v61, %v6882_v56  ;;  %v6597_v35 = vpop.eup %6596 }
 0x2b3   :  { %v570_v49 = vadd.f32 1.0, %v6597_v35 }
 0x2b4   :  { %4950 = vmatmul.mubr.msk.f32.vlgmr.msra.gmra.mrb[10].mxu0 %vm422_vm4, %v649_v62 }
 0x2b5   :  { %5992 = vmatpush3.bf16.msra.mxu0 %v6733_v10  ;;  %4987 = vmatprep.mubr.msk.f32.mxu0 %vm6660_vm1, %v6659_v2  ;;  %6598 = vrcp.f32 %v570_v49 }
 0x2b6   :  { %5993 = vmatprep.subr.bf16.mxu0 %v6661_v11 }
 0x2b9   :  { %5995 = vmatpush3.bf16.msra.mxu0 %v6747_v15 }
 0x2ba   :  { %5996 = vmatprep.subr.bf16.mxu0 %v6661_v11 }
 0x2bd   :  { %5998 = vmatpush3.bf16.msra.mxu0 %v6765_v20 }
 0x2be   :  { %5999 = vmatprep.subr.bf16.mxu0 %v6661_v11 }
 0x2bf   :  { %v6599_v54 = vpop.eup %6598 }
 0x2c0   :  { %v799_v62 = vsub.f32 1.0, %v6599_v54 }
 0x2c1   :  { %6001 = vmatpush3.bf16.msra.mxu0 %v6781_v24 }
 0x2c2   :  { %6026 = vmatprep.subr.bf16.mxu0 %v6661_v11 }
 0x387   :  { %v719_v16 = vpop.f32.mrb[10].mxu0 }
 0x388   :  { %v720_v17 = vadd.f32 %v719_v16, %v320_v12  ;;  %v4951_v22 = vpop.f32.mrb[11].mxu0  ;;  %v801_v12 = vmul.f32 %v6599_v54, %v6882_v56  ;;  %v223_v56 = vadd.f32 %v6892_v59, %v7005_v47 }
 0x38a   :  { %v723_v25 = vmax.f32 %v720_v17, 0.0 }
 0x38c   :  { %4969 = vmatmul.mubr.msk.f32.vlgmr.msra.gmra.mrb[10].mxu1 %vm422_vm4, %v723_v25 }
 0x38d   :  { %6004 = vmatpush3.bf16.msra.mxu1 %v6799_v30  ;;  %5022 = vmatprep.mubr.msk.f32.mxu1 %vm6660_vm1, %v6659_v2 }
 0x38e   :  { %6005 = vmatprep.subr.bf16.mxu1 %v6661_v11 }
 0x391   :  { %6007 = vmatpush3.bf16.msra.mxu1 %v6810_v33 }
 0x392   :  { %6008 = vmatprep.subr.bf16.mxu1 %v6661_v11 }
 0x395   :  { %6010 = vmatpush3.bf16.msra.mxu1 %v6822_v36 }
 0x396   :  { %6011 = vmatprep.subr.bf16.mxu1 %v6661_v11 }
 0x399   :  { %6013 = vmatpush3.bf16.msra.mxu1 %v6834_v39 }
 0x39a   :  { %6014 = vmatprep.subr.bf16.mxu1 %v6661_v11 }
 0x39d   :  { %6016 = vmatpush3.bf16.msra.mxu1 %v6846_v42 }
 0x39e   :  { %6017 = vmatprep.subr.bf16.mxu1 %v6661_v11 }
 0x3a1   :  { %6019 = vmatpush3.bf16.msra.mxu1 %v6856_v45 }
 0x3a2   :  { %6020 = vmatprep.subr.bf16.mxu1 %v6661_v11 }
 0x3a5   :  { %6022 = vmatpush3.bf16.msra.mxu1 %v6867_v48 }
 0x3a6   :  { %6023 = vmatprep.subr.bf16.mxu1 %v6661_v11 }
 0x3a9   :  { %6025 = vmatpush3.bf16.msra.mxu1 %v6969_v26 }
 0x3aa   :  { %6050 = vmatprep.subr.bf16.mxu1 %v6661_v11 }
 0x45f   :  { %v793_v53 = vpop.f32.mrb[10].mxu1 }
 0x460   :  { %v794_v57 = vadd.f32 %v7140_v51, %v793_v53  ;;  %v4970_v61 = vpop.f32.mrb[11].mxu1 }
 0x462   :  { %v797_v44 = vand.u32 2147483647, %v794_v57 }
 0x464   :  { %v798_v4 = vsel %vm421_vm5, %v797_v44, %v794_v57 }
 0x465   :  { %v800_v5 = vmul.f32 %v799_v62, %v798_v4 }
 0x467   :  { %v7149_v16 = vadd.f32 %v801_v12, %v800_v5 }
 0x469   :  { %4988 = vmatmul.mubr.msk.f32.vlgmr.msra.gmra.mrb[12].mxu0 %vm422_vm4, %v7149_v16 }
 0x46a   :  { %6028 = vmatpush3.bf16.msra.mxu0 %v6880_v55  ;;  %5057 = vmatprep.mubr.msk.f32.mxu0 %vm6660_vm1, %v6659_v2 }
 0x46b   :  { %6029 = vmatprep.subr.bf16.mxu0 %v6661_v11 }
 0x46e   :  { %6031 = vmatpush3.bf16.msra.mxu0 %v6895_v60 }
 0x46f   :  { %6032 = vmatprep.subr.bf16.mxu0 %v6661_v11 }
 0x472   :  { %6034 = vmatpush3.bf16.msra.mxu0 %v6909_v1 }
 0x473   :  { %6035 = vmatprep.subr.bf16.mxu0 %v6661_v11 }
 0x476   :  { %6037 = vmatpush3.bf16.msra.mxu0 %v6921_v6 }
 0x477   :  { %6038 = vmatprep.subr.bf16.mxu0 %v6661_v11 }
 0x47a   :  { %6040 = vmatpush3.bf16.msra.mxu0 %v6931_v9 }
 0x47b   :  { %6041 = vmatprep.subr.bf16.mxu0 %v6661_v11 }
 0x47e   :  { %6043 = vmatpush3.bf16.msra.mxu0 %v6941_v14 }
 0x47f   :  { %6044 = vmatprep.subr.bf16.mxu0 %v6661_v11 }
 0x482   :  { %6046 = vmatpush3.bf16.msra.mxu0 %v6951_v18 }
 0x483   :  { %6047 = vmatprep.subr.bf16.mxu0 %v6661_v11 }
 0x486   :  { %6049 = vmatpush3.bf16.msra.mxu0 %v6974_v28 }
 0x487   :  { %6062 = vmatprep.subr.bf16.mxu0 %v6661_v11 }
 0x53c   :  { %v872_v17 = vpop.f32.mrb[12].mxu0 }
 0x53d   :  { %v873_v22 = vadd.f32 %v872_v17, %v223_v56  ;;  %v4989_v25 = vpop.f32.mrb[13].mxu0 }
 0x53f   :  { %v876_v34 = vmax.f32 %v873_v22, 0.0 }
 0x541   :  { %5023 = vmatmul.mubr.f32.vlgmr.msra.gmra.mrb[12].mxu1 %v876_v34  ;;  %5058 = vmatmul.mubr.f32.vlgmr.msra.gmra.mrb[14].mxu0 %v876_v34 }
 0x542   :  { %6052 = vmatpush3.bf16.msra.mxu1 %v7018_v58  ;;  %5076 = vmatprep.mubr.msk.f32.mxu1 %vm6660_vm1, %v6659_v2 }
 0x543   :  { %6053 = vmatprep.subr.bf16.mxu1 %v6661_v11  ;;  %6064 = vmatpush3.bf16.msra.mxu0 %v7061_v23 }
 0x544   :  { %6065 = vmatprep.subr.bf16.mxu0 %v6661_v11  ;;  %5095 = vmatprep.mubr.msk.f32.mxu0 %vm6660_vm1, %v6659_v2 }
 0x546   :  { %6055 = vmatpush3.bf16.msra.mxu1 %v7028_v63 }
 0x547   :  { %6056 = vmatprep.subr.bf16.mxu1 %v6661_v11  ;;  %6067 = vmatpush3.bf16.msra.mxu0 %v7067_v27 }
 0x548   :  { %6068 = vmatprep.subr.bf16.mxu0 %v6661_v11 }
 0x54a   :  { %6058 = vmatpush3.bf16.msra.mxu1 %v7037_v7 }
 0x54b   :  { %6059 = vmatprep.subr.bf16.mxu1 %v6661_v11  ;;  %6070 = vmatpush3.bf16.msra.mxu0 %v7077_v38 }
 0x54c   :  { %6071 = vmatprep.subr.bf16.mxu0 %v6661_v11 }
 0x54e   :  { %6061 = vmatpush3.bf16.msra.mxu1 %v7047_v13 }
 0x54f   :  { %6073 = vmatpush3.bf16.msra.mxu0 %v7106_v8  ;;  %6074 = vmatprep.subr.bf16.mxu1 %v6661_v11 }
 0x550   :  { %6086 = vmatprep.subr.bf16.mxu0 %v6661_v11 }
 0x614   :  { %v943_v59 = vpop.f32.mrb[12].mxu1  ;;  %v1019_v31 = vpop.f32.mrb[14].mxu0 }
 0x615   :  { %v1020_v35 = vadd.f32 %v7085_v41, %v1019_v31  ;;  %v5024_v49 = vpop.f32.mrb[13].mxu1  ;;  %v5059_v50 = vpop.f32.mrb[15].mxu0 }
 0x617   :  { %v4236_v53 = vmul.f32 -1.442695, %v1020_v35 }
 0x619   :  { %6600 = vpow2.f32 %v4236_v53 }
 0x623   :  { %v6601_v54 = vpop.eup %6600 }
 0x624   :  { %v1026_v57 = vadd.f32 1.0, %v6601_v54 }
 0x626   :  { %6602 = vrcp.f32 %v1026_v57 }
 0x630   :  { %v6603_v61 = vpop.eup %6602 }
 0x631   :  { %v1029_v44 = vmul.f32 %v6603_v61, %v7149_v16 }
 0x633   :  { %5077 = vmatmul.mubr.msk.f32.vlgmr.msra.gmra.mrb[14].mxu1 %vm422_vm4, %v1029_v44 }
 0x634   :  { %6076 = vmatpush3.bf16.msra.mxu1 %v6733_v10  ;;  %5114 = vmatprep.mubr.msk.f32.mxu1 %vm6660_vm1, %v6659_v2 }
 0x635   :  { %6077 = vmatprep.subr.bf16.mxu1 %v6661_v11 }
 0x638   :  { %6079 = vmatpush3.bf16.msra.mxu1 %v6747_v15 }
 0x639   :  { %6080 = vmatprep.subr.bf16.mxu1 %v6661_v11 }
 0x63c   :  { %6082 = vmatpush3.bf16.msra.mxu1 %v6765_v20 }
 0x63d   :  { %6083 = vmatprep.subr.bf16.mxu1 %v6661_v11 }
 0x640   :  { %6085 = vmatpush3.bf16.msra.mxu1 %v6781_v24 }
 0x641   :  { %6110 = vmatprep.subr.bf16.mxu1 %v6661_v11 }
 0x706   :  { %v1099_v62 = vpop.f32.mrb[14].mxu1 }
 0x707   :  { %v1100_v4 = vadd.f32 %v1099_v62, %v6986_v32  ;;  %v5078_v5 = vpop.f32.mrb[15].mxu1  ;;  %v944_v32 = vadd.f32 %v7134_v29, %v943_v59 }
 0x709   :  { %v1103_v12 = vmax.f32 %v1100_v4, 0.0  ;;  %v4235_v56 = vmul.f32 -1.442695, %v944_v32 }
 0x70b   :  { %5096 = vmatmul.mubr.msk.f32.vlgmr.msra.gmra.mrb[16].mxu0 %vm422_vm4, %v1103_v12  ;;  %6604 = vpow2.f32 %v4235_v56 }
 0x70c   :  { %6088 = vmatpush3.bf16.msra.mxu0 %v6799_v30  ;;  %5149 = vmatprep.mubr.msk.f32.mxu0 %vm6660_vm1, %v6659_v2 }
 0x70d   :  { %6089 = vmatprep.subr.bf16.mxu0 %v6661_v11 }
 0x710   :  { %6091 = vmatpush3.bf16.msra.mxu0 %v6810_v33 }
 0x711   :  { %6092 = vmatprep.subr.bf16.mxu0 %v6661_v11 }
 0x714   :  { %6094 = vmatpush3.bf16.msra.mxu0 %v6822_v36 }
 0x715   :  { %6095 = vmatprep.subr.bf16.mxu0 %v6661_v11  ;;  %v6605_v17 = vpop.eup %6604 }
 0x716   :  { %v950_v22 = vadd.f32 1.0, %v6605_v17 }
 0x718   :  { %6097 = vmatpush3.bf16.msra.mxu0 %v6834_v39  ;;  %6606 = vrcp.f32 %v950_v22 }
 0x719   :  { %6098 = vmatprep.subr.bf16.mxu0 %v6661_v11 }
 0x71c   :  { %6100 = vmatpush3.bf16.msra.mxu0 %v6846_v42 }
 0x71d   :  { %6101 = vmatprep.subr.bf16.mxu0 %v6661_v11 }
 0x720   :  { %6103 = vmatpush3.bf16.msra.mxu0 %v6856_v45 }
 0x721   :  { %6104 = vmatprep.subr.bf16.mxu0 %v6661_v11 }
 0x722   :  { %v6607_v34 = vpop.eup %6606 }
 0x723   :  { %v1179_v50 = vsub.f32 1.0, %v6607_v34  ;;  %v1181_v57 = vmul.f32 %v6607_v34, %v7149_v16  ;;  %v228_v16 = vadd.f32 %v7005_v47, %v6911_v3 }
 0x724   :  { %6106 = vmatpush3.bf16.msra.mxu0 %v6867_v48 }
 0x725   :  { %6107 = vmatprep.subr.bf16.mxu0 %v6661_v11 }
 0x728   :  { %6109 = vmatpush3.bf16.msra.mxu0 %v6969_v26 }
 0x729   :  { %6134 = vmatprep.subr.bf16.mxu0 %v6661_v11 }
 0x7de   :  { %v1173_v25 = vpop.f32.mrb[16].mxu0 }
 0x7df   :  { %v1174_v31 = vadd.f32 %v7140_v51, %v1173_v25  ;;  %v5097_v35 = vpop.f32.mrb[17].mxu0 }
 0x7e1   :  { %v1177_v49 = vand.u32 2147483647, %v1174_v31 }
 0x7e3   :  { %v1178_v53 = vsel %vm421_vm5, %v1177_v49, %v1174_v31 }
 0x7e4   :  { %v1180_v54 = vmul.f32 %v1179_v50, %v1178_v53 }
 0x7e6   :  { %v7231_v61 = vadd.f32 %v1181_v57, %v1180_v54 }
 0x7e8   :  { %5115 = vmatmul.mubr.msk.f32.vlgmr.msra.gmra.mrb[16].mxu1 %vm422_vm4, %v7231_v61 }
 0x7e9   :  { %6112 = vmatpush3.bf16.msra.mxu1 %v6880_v55  ;;  %5184 = vmatprep.mubr.msk.f32.mxu1 %vm6660_vm1, %v6659_v2 }
 0x7ea   :  { %6113 = vmatprep.subr.bf16.mxu1 %v6661_v11 }
 0x7ed   :  { %6115 = vmatpush3.bf16.msra.mxu1 %v6895_v60 }
 0x7ee   :  { %6116 = vmatprep.subr.bf16.mxu1 %v6661_v11 }
 0x7f1   :  { %6118 = vmatpush3.bf16.msra.mxu1 %v6909_v1 }
 0x7f2   :  { %6119 = vmatprep.subr.bf16.mxu1 %v6661_v11 }
 0x7f5   :  { %6121 = vmatpush3.bf16.msra.mxu1 %v6921_v6 }
 0x7f6   :  { %6122 = vmatprep.subr.bf16.mxu1 %v6661_v11 }
 0x7f9   :  { %6124 = vmatpush3.bf16.msra.mxu1 %v6931_v9 }
 0x7fa   :  { %6125 = vmatprep.subr.bf16.mxu1 %v6661_v11 }
 0x7fd   :  { %6127 = vmatpush3.bf16.msra.mxu1 %v6941_v14 }
 0x7fe   :  { %6128 = vmatprep.subr.bf16.mxu1 %v6661_v11 }
 0x801   :  { %6130 = vmatpush3.bf16.msra.mxu1 %v6951_v18 }
 0x802   :  { %6131 = vmatprep.subr.bf16.mxu1 %v6661_v11 }
 0x805   :  { %6133 = vmatpush3.bf16.msra.mxu1 %v6974_v28 }
 0x806   :  { %6146 = vmatprep.subr.bf16.mxu1 %v6661_v11 }
 0x8bb   :  { %v1252_v59 = vpop.f32.mrb[16].mxu1 }
 0x8bc   :  { %v1253_v44 = vadd.f32 %v1252_v59, %v228_v16  ;;  %v5116_v62 = vpop.f32.mrb[17].mxu1 }
 0x8be   :  { %v1256_v4 = vmax.f32 %v1253_v44, 0.0 }
 0x8c0   :  { %5150 = vmatmul.mubr.f32.vlgmr.msra.gmra.mrb[18].mxu0 %v1256_v4  ;;  %5185 = vmatmul.mubr.f32.vlgmr.msra.gmra.mrb[18].mxu1 %v1256_v4 }
 0x8c1   :  { %6136 = vmatpush3.bf16.msra.mxu0 %v7018_v58  ;;  %5203 = vmatprep.mubr.msk.f32.mxu0 %vm6660_vm1, %v6659_v2 }
 0x8c2   :  { %6137 = vmatprep.subr.bf16.mxu0 %v6661_v11  ;;  %6148 = vmatpush3.bf16.msra.mxu1 %v7061_v23 }
 0x8c3   :  { %6149 = vmatprep.subr.bf16.mxu1 %v6661_v11  ;;  %5222 = vmatprep.mubr.msk.f32.mxu1 %vm6660_vm1, %v6659_v2 }
 0x8c5   :  { %6139 = vmatpush3.bf16.msra.mxu0 %v7028_v63 }
 0x8c6   :  { %6140 = vmatprep.subr.bf16.mxu0 %v6661_v11  ;;  %6151 = vmatpush3.bf16.msra.mxu1 %v7067_v27 }
 0x8c7   :  { %6152 = vmatprep.subr.bf16.mxu1 %v6661_v11 }
 0x8c9   :  { %6142 = vmatpush3.bf16.msra.mxu0 %v7037_v7 }
 0x8ca   :  { %6143 = vmatprep.subr.bf16.mxu0 %v6661_v11  ;;  %6154 = vmatpush3.bf16.msra.mxu1 %v7077_v38 }
 0x8cb   :  { %6155 = vmatprep.subr.bf16.mxu1 %v6661_v11 }
 0x8cd   :  { %6145 = vmatpush3.bf16.msra.mxu0 %v7047_v13 }
 0x8ce   :  { %6157 = vmatpush3.bf16.msra.mxu1 %v7106_v8  ;;  %6158 = vmatprep.subr.bf16.mxu0 %v6661_v11 }
 0x8cf   :  { %6170 = vmatprep.subr.bf16.mxu1 %v6661_v11 }
 0x993   :  { %v1323_v3 = vpop.f32.mrb[18].mxu0  ;;  %v1399_v5 = vpop.f32.mrb[18].mxu1 }
 0x994   :  { %v1400_v12 = vadd.f32 %v7085_v41, %v1399_v5  ;;  %v5151_v32 = vpop.f32.mrb[19].mxu0  ;;  %v5186_v56 = vpop.f32.mrb[19].mxu1 }
 0x996   :  { %v4241_v17 = vmul.f32 -1.442695, %v1400_v12 }
 0x998   :  { %6608 = vpow2.f32 %v4241_v17 }
 0x9a2   :  { %v6609_v22 = vpop.eup %6608 }
 0x9a3   :  { %v1406_v25 = vadd.f32 1.0, %v6609_v22 }
 0x9a5   :  { %6610 = vrcp.f32 %v1406_v25 }
 0x9af   :  { %v6611_v34 = vpop.eup %6610 }
 0x9b0   :  { %v1409_v31 = vmul.f32 %v6611_v34, %v7231_v61 }
 0x9b2   :  { %5204 = vmatmul.mubr.msk.f32.vlgmr.msra.gmra.mrb[20].mxu0 %vm422_vm4, %v1409_v31 }
 0x9b3   :  { %6160 = vmatpush3.bf16.msra.mxu0 %v6733_v10  ;;  %5241 = vmatprep.mubr.msk.f32.mxu0 %vm6660_vm1, %v6659_v2 }
 0x9b4   :  { %6161 = vmatprep.subr.bf16.mxu0 %v6661_v11 }
 0x9b7   :  { %6163 = vmatpush3.bf16.msra.mxu0 %v6747_v15 }
 0x9b8   :  { %6164 = vmatprep.subr.bf16.mxu0 %v6661_v11 }
 0x9bb   :  { %6166 = vmatpush3.bf16.msra.mxu0 %v6765_v20 }
 0x9bc   :  { %6167 = vmatprep.subr.bf16.mxu0 %v6661_v11 }
 0x9bf   :  { %6169 = vmatpush3.bf16.msra.mxu0 %v6781_v24 }
 0x9c0   :  { %6194 = vmatprep.subr.bf16.mxu0 %v6661_v11 }
 0xa85   :  { %v1479_v35 = vpop.f32.mrb[20].mxu0 }
 0xa86   :  { %v1480_v49 = vadd.f32 %v1479_v35, %v6994_v40  ;;  %v5205_v50 = vpop.f32.mrb[21].mxu0  ;;  %v1324_v40 = vadd.f32 %v7134_v29, %v1323_v3 }
 0xa88   :  { %v1483_v53 = vmax.f32 %v1480_v49, 0.0  ;;  %v4240_v54 = vmul.f32 -1.442695, %v1324_v40 }
 0xa8a   :  { %5223 = vmatmul.mubr.msk.f32.vlgmr.msra.gmra.mrb[20].mxu1 %vm422_vm4, %v1483_v53  ;;  %6612 = vpow2.f32 %v4240_v54 }
 0xa8b   :  { %6172 = vmatpush3.bf16.msra.mxu1 %v6799_v30  ;;  %5276 = vmatprep.mubr.msk.f32.mxu1 %vm6660_vm1, %v6659_v2 }
 0xa8c   :  { %6173 = vmatprep.subr.bf16.mxu1 %v6661_v11 }
 0xa8f   :  { %6175 = vmatpush3.bf16.msra.mxu1 %v6810_v33 }
 0xa90   :  { %6176 = vmatprep.subr.bf16.mxu1 %v6661_v11 }
 0xa93   :  { %6178 = vmatpush3.bf16.msra.mxu1 %v6822_v36 }
 0xa94   :  { %6179 = vmatprep.subr.bf16.mxu1 %v6661_v11  ;;  %v6613_v57 = vpop.eup %6612 }
 0xa95   :  { %v1330_v16 = vadd.f32 1.0, %v6613_v57 }
 0xa97   :  { %6181 = vmatpush3.bf16.msra.mxu1 %v6834_v39  ;;  %6614 = vrcp.f32 %v1330_v16 }
 0xa98   :  { %6182 = vmatprep.subr.bf16.mxu1 %v6661_v11 }
 0xa9b   :  { %6184 = vmatpush3.bf16.msra.mxu1 %v6846_v42 }
 0xa9c   :  { %6185 = vmatprep.subr.bf16.mxu1 %v6661_v11 }
 0xa9f   :  { %6187 = vmatpush3.bf16.msra.mxu1 %v6856_v45 }
 0xaa0   :  { %6188 = vmatprep.subr.bf16.mxu1 %v6661_v11 }
 0xaa1   :  { %v6615_v44 = vpop.eup %6614 }
 0xaa2   :  { %v1559_v12 = vsub.f32 1.0, %v6615_v44  ;;  %v1561_v17 = vmul.f32 %v6615_v44, %v7231_v61  ;;  %v233_v61 = vadd.f32 %v6906_v0, %v7005_v47 }
 0xaa3   :  { %6190 = vmatpush3.bf16.msra.mxu1 %v6867_v48 }
 0xaa4   :  { %6191 = vmatprep.subr.bf16.mxu1 %v6661_v11 }
 0xaa7   :  { %6193 = vmatpush3.bf16.msra.mxu1 %v6969_v26 }
 0xaa8   :  { %6218 = vmatprep.subr.bf16.mxu1 %v6661_v11 }
 0xb5d   :  { %v1553_v59 = vpop.f32.mrb[20].mxu1 }
 0xb5e   :  { %v1554_v62 = vadd.f32 %v7140_v51, %v1553_v59  ;;  %v5224_v4 = vpop.f32.mrb[21].mxu1 }
 0xb60   :  { %v1557_v5 = vand.u32 2147483647, %v1554_v62 }
 0xb62   :  { %v1558_v32 = vsel %vm421_vm5, %v1557_v5, %v1554_v62 }
 0xb63   :  { %v1560_v56 = vmul.f32 %v1559_v12, %v1558_v32 }
 0xb65   :  { %v7313_v22 = vadd.f32 %v1561_v17, %v1560_v56 }
 0xb67   :  { %5242 = vmatmul.mubr.msk.f32.vlgmr.msra.gmra.mrb[22].mxu0 %vm422_vm4, %v7313_v22 }
 0xb68   :  { %6196 = vmatpush3.bf16.msra.mxu0 %v6880_v55  ;;  %5311 = vmatprep.mubr.msk.f32.mxu0 %vm6660_vm1, %v6659_v2 }
 0xb69   :  { %6197 = vmatprep.subr.bf16.mxu0 %v6661_v11 }
 0xb6c   :  { %6199 = vmatpush3.bf16.msra.mxu0 %v6895_v60 }
 0xb6d   :  { %6200 = vmatprep.subr.bf16.mxu0 %v6661_v11 }
 0xb70   :  { %6202 = vmatpush3.bf16.msra.mxu0 %v6909_v1 }
 0xb71   :  { %6203 = vmatprep.subr.bf16.mxu0 %v6661_v11 }
 0xb74   :  { %6205 = vmatpush3.bf16.msra.mxu0 %v6921_v6 }
 0xb75   :  { %6206 = vmatprep.subr.bf16.mxu0 %v6661_v11 }
 0xb78   :  { %6208 = vmatpush3.bf16.msra.mxu0 %v6931_v9 }
 0xb79   :  { %6209 = vmatprep.subr.bf16.mxu0 %v6661_v11 }
 0xb7c   :  { %6211 = vmatpush3.bf16.msra.mxu0 %v6941_v14 }
 0xb7d   :  { %6212 = vmatprep.subr.bf16.mxu0 %v6661_v11 }
 0xb80   :  { %6214 = vmatpush3.bf16.msra.mxu0 %v6951_v18 }
 0xb81   :  { %6215 = vmatprep.subr.bf16.mxu0 %v6661_v11 }
 0xb84   :  { %6217 = vmatpush3.bf16.msra.mxu0 %v6974_v28 }
 0xb85   :  { %6230 = vmatprep.subr.bf16.mxu0 %v6661_v11 }
 0xc3a   :  { %v1632_v3 = vpop.f32.mrb[22].mxu0 }
 0xc3b   :  { %v1633_v25 = vadd.f32 %v1632_v3, %v233_v61  ;;  %v5243_v34 = vpop.f32.mrb[23].mxu0 }
 0xc3d   :  { %v1636_v31 = vmax.f32 %v1633_v25, 0.0 }
 0xc3f   :  { %5277 = vmatmul.mubr.f32.vlgmr.msra.gmra.mrb[22].mxu1 %v1636_v31  ;;  %5312 = vmatmul.mubr.f32.vlgmr.msra.gmra.mrb[24].mxu0 %v1636_v31 }
 0xc40   :  { %6220 = vmatpush3.bf16.msra.mxu1 %v7018_v58  ;;  %5330 = vmatprep.mubr.msk.f32.mxu1 %vm6660_vm1, %v6659_v2 }
 0xc41   :  { %6221 = vmatprep.subr.bf16.mxu1 %v6661_v11  ;;  %6232 = vmatpush3.bf16.msra.mxu0 %v7061_v23 }
 0xc42   :  { %6233 = vmatprep.subr.bf16.mxu0 %v6661_v11  ;;  %5349 = vmatprep.mubr.msk.f32.mxu0 %vm6660_vm1, %v6659_v2 }
 0xc44   :  { %6223 = vmatpush3.bf16.msra.mxu1 %v7028_v63 }
 0xc45   :  { %6224 = vmatprep.subr.bf16.mxu1 %v6661_v11  ;;  %6235 = vmatpush3.bf16.msra.mxu0 %v7067_v27 }
 0xc46   :  { %6236 = vmatprep.subr.bf16.mxu0 %v6661_v11 }
 0xc48   :  { %6226 = vmatpush3.bf16.msra.mxu1 %v7037_v7 }
 0xc49   :  { %6227 = vmatprep.subr.bf16.mxu1 %v6661_v11  ;;  %6238 = vmatpush3.bf16.msra.mxu0 %v7077_v38 }
 0xc4a   :  { %6239 = vmatprep.subr.bf16.mxu0 %v6661_v11 }
 0xc4c   :  { %6229 = vmatpush3.bf16.msra.mxu1 %v7047_v13 }
 0xc4d   :  { %6241 = vmatpush3.bf16.msra.mxu0 %v7106_v8  ;;  %6242 = vmatprep.subr.bf16.mxu1 %v6661_v11 }
 0xc4e   :  { %6254 = vmatprep.subr.bf16.mxu0 %v6661_v11 }
 0xd12   :  { %v1703_v0 = vpop.f32.mrb[22].mxu1  ;;  %v1779_v35 = vpop.f32.mrb[24].mxu0 }
 0xd13   :  { %v1780_v49 = vadd.f32 %v7085_v41, %v1779_v35  ;;  %v5278_v50 = vpop.f32.mrb[23].mxu1  ;;  %v5313_v53 = vpop.f32.mrb[25].mxu0 }
 0xd15   :  { %v4246_v40 = vmul.f32 -1.442695, %v1780_v49 }
 0xd17   :  { %6616 = vpow2.f32 %v4246_v40 }
 0xd21   :  { %v6617_v54 = vpop.eup %6616 }
 0xd22   :  { %v1786_v57 = vadd.f32 1.0, %v6617_v54 }
 0xd24   :  { %6618 = vrcp.f32 %v1786_v57 }
 0xd2e   :  { %v6619_v16 = vpop.eup %6618 }
 0xd2f   :  { %v1789_v59 = vmul.f32 %v6619_v16, %v7313_v22 }
 0xd31   :  { %5331 = vmatmul.mubr.msk.f32.vlgmr.msra.gmra.mrb[24].mxu1 %vm422_vm4, %v1789_v59 }
 0xd32   :  { %6244 = vmatpush3.bf16.msra.mxu1 %v6733_v10  ;;  %5368 = vmatprep.mubr.msk.f32.mxu1 %vm6660_vm1, %v6659_v2 }
 0xd33   :  { %6245 = vmatprep.subr.bf16.mxu1 %v6661_v11 }
 0xd36   :  { %6247 = vmatpush3.bf16.msra.mxu1 %v6747_v15 }
 0xd37   :  { %6248 = vmatprep.subr.bf16.mxu1 %v6661_v11 }
 0xd3a   :  { %6250 = vmatpush3.bf16.msra.mxu1 %v6765_v20 }
 0xd3b   :  { %6251 = vmatprep.subr.bf16.mxu1 %v6661_v11 }
 0xd3e   :  { %6253 = vmatpush3.bf16.msra.mxu1 %v6781_v24 }
 0xd3f   :  { %6278 = vmatprep.subr.bf16.mxu1 %v6661_v11 }
 0xe04   :  { %v1859_v44 = vpop.f32.mrb[24].mxu1 }
 0xe05   :  { %v1860_v62 = vadd.f32 %v1859_v44, %v6991_v37  ;;  %v5332_v4 = vpop.f32.mrb[25].mxu1  ;;  %v1704_v37 = vadd.f32 %v7134_v29, %v1703_v0 }
 0xe07   :  { %v1863_v5 = vmax.f32 %v1860_v62, 0.0  ;;  %v4245_v12 = vmul.f32 -1.442695, %v1704_v37 }
 0xe09   :  { %5350 = vmatmul.mubr.msk.f32.vlgmr.msra.gmra.mrb[26].mxu0 %vm422_vm4, %v1863_v5  ;;  %6620 = vpow2.f32 %v4245_v12 }
 0xe0a   :  { %6256 = vmatpush3.bf16.msra.mxu0 %v6799_v30  ;;  %5403 = vmatprep.mubr.msk.f32.mxu0 %vm6660_vm1, %v6659_v2 }
 0xe0b   :  { %6257 = vmatprep.subr.bf16.mxu0 %v6661_v11 }
 0xe0e   :  { %6259 = vmatpush3.bf16.msra.mxu0 %v6810_v33 }
 0xe0f   :  { %6260 = vmatprep.subr.bf16.mxu0 %v6661_v11 }
 0xe12   :  { %6262 = vmatpush3.bf16.msra.mxu0 %v6822_v36 }
 0xe13   :  { %6263 = vmatprep.subr.bf16.mxu0 %v6661_v11  ;;  %v6621_v32 = vpop.eup %6620 }
 0xe14   :  { %v1710_v56 = vadd.f32 1.0, %v6621_v32 }
 0xe16   :  { %6265 = vmatpush3.bf16.msra.mxu0 %v6834_v39  ;;  %6622 = vrcp.f32 %v1710_v56 }
 0xe17   :  { %6266 = vmatprep.subr.bf16.mxu0 %v6661_v11 }
 0xe1a   :  { %6268 = vmatpush3.bf16.msra.mxu0 %v6846_v42 }
 0xe1b   :  { %6269 = vmatprep.subr.bf16.mxu0 %v6661_v11 }
 0xe1e   :  { %6271 = vmatpush3.bf16.msra.mxu0 %v6856_v45 }
 0xe1f   :  { %6272 = vmatprep.subr.bf16.mxu0 %v6661_v11 }
 0xe20   :  { %v6623_v61 = vpop.eup %6622 }
 0xe21   :  { %v1939_v31 = vsub.f32 1.0, %v6623_v61  ;;  %v1941_v50 = vmul.f32 %v6623_v61, %v7313_v22  ;;  %v238_v22 = vadd.f32 %v7005_v47, %v6958_v21 }
 0xe22   :  { %6274 = vmatpush3.bf16.msra.mxu0 %v6867_v48 }
 0xe23   :  { %6275 = vmatprep.subr.bf16.mxu0 %v6661_v11 }
 0xe26   :  { %6277 = vmatpush3.bf16.msra.mxu0 %v6969_v26 }
 0xe27   :  { %6302 = vmatprep.subr.bf16.mxu0 %v6661_v11 }
 0xedc   :  { %v1933_v17 = vpop.f32.mrb[26].mxu0 }
 0xedd   :  { %v1934_v3 = vadd.f32 %v7140_v51, %v1933_v17  ;;  %v5351_v25 = vpop.f32.mrb[27].mxu0 }
 0xedf   :  { %v1937_v34 = vand.u32 2147483647, %v1934_v3 }
 0xee1   :  { %v1938_v35 = vsel %vm421_vm5, %v1937_v34, %v1934_v3  ;;  %v2705_v3 = vld [vmem:[%s7977_s2 + $0x228] sm:$0xff]  ;;  %v2706_v34 = vld [vmem:[%s7977_s2 + $0x230] sm:$0xff] }
 0xee2   :  { %v1940_v49 = vmul.f32 %v1939_v31, %v1938_v35  ;;  %v6414_v31 = vpack.c.bf16 %v2706_v34, %v2705_v3  ;;  %v2970_v3 = vld [vmem:[%s7977_s2 + $0x400] sm:$0xff]  ;;  %v4261_v34 = vld [vmem:[%s7977_s2 + $0x2c8] ss:$0 sm:$0xff] }
 0xee4   :  { %v7395_v53 = vadd.f32 %v1941_v50, %v1940_v49 }
 0xee6   :  { %5369 = vmatmul.mubr.msk.f32.vlgmr.msra.gmra.mrb[26].mxu1 %vm422_vm4, %v7395_v53 }
 0xee7   :  { %6280 = vmatpush3.bf16.msra.mxu1 %v6880_v55  ;;  %5438 = vmatprep.mubr.msk.f32.mxu1 %vm6660_vm1, %v6659_v2 }
 0xee8   :  { %6281 = vmatprep.subr.bf16.mxu1 %v6661_v11 }
 0xeeb   :  { %6283 = vmatpush3.bf16.msra.mxu1 %v6895_v60 }
 0xeec   :  { %6284 = vmatprep.subr.bf16.mxu1 %v6661_v11 }
 0xeef   :  { %6286 = vmatpush3.bf16.msra.mxu1 %v6909_v1 }
 0xef0   :  { %6287 = vmatprep.subr.bf16.mxu1 %v6661_v11 }
 0xef3   :  { %6289 = vmatpush3.bf16.msra.mxu1 %v6921_v6 }
 0xef4   :  { %6290 = vmatprep.subr.bf16.mxu1 %v6661_v11 }
 0xef7   :  { %6292 = vmatpush3.bf16.msra.mxu1 %v6931_v9 }
 0xef8   :  { %6293 = vmatprep.subr.bf16.mxu1 %v6661_v11 }
 0xefb   :  { %6295 = vmatpush3.bf16.msra.mxu1 %v6941_v14 }
 0xefc   :  { %6296 = vmatprep.subr.bf16.mxu1 %v6661_v11 }
 0xeff   :  { %6298 = vmatpush3.bf16.msra.mxu1 %v6951_v18 }
 0xf00   :  { %6299 = vmatprep.subr.bf16.mxu1 %v6661_v11 }
 0xf03   :  { %6301 = vmatpush3.bf16.msra.mxu1 %v6974_v28 }
 0xf04   :  { %6314 = vmatprep.subr.bf16.mxu1 %v6661_v11 }
 0xfb9   :  { %v2012_v0 = vpop.f32.mrb[26].mxu1 }
 0xfba   :  { %v2013_v40 = vadd.f32 %v2012_v0, %v238_v22  ;;  %v5370_v54 = vpop.f32.mrb[27].mxu1  ;;  %v2707_v22 = vld [vmem:[%s7977_s2 + $0x238] sm:$0xff]  ;;  %v2708_v0 = vld [vmem:[%s7977_s2 + $0x240] sm:$0xff] }
 0xfbb   :  { %v2710_v54 = vld [vmem:[%s7977_s2 + $0x250] sm:$0xff] }
 0xfbc   :  { %v2016_v57 = vmax.f32 %v2013_v40, 0.0  ;;  %v6417_v40 = vpack.c.bf16 %v2708_v0, %v2707_v22  ;;  %v2973_v0 = vld [vmem:[%s7977_s2 + $0x418] sm:$0x3] }
 0xfbe   :  { %5404 = vmatmul.mubr.f32.vlgmr.msra.gmra.mrb[28].mxu0 %v2016_v57  ;;  %5439 = vmatmul.mubr.f32.vlgmr.msra.gmra.mrb[28].mxu1 %v2016_v57 }
 0xfbf   :  { %6304 = vmatpush3.bf16.msra.mxu0 %v7018_v58  ;;  %5457 = vmatprep.mubr.msk.f32.mxu0 %vm6660_vm1, %v6659_v2 }
 0xfc0   :  { %6305 = vmatprep.subr.bf16.mxu0 %v6661_v11  ;;  %6316 = vmatpush3.bf16.msra.mxu1 %v7061_v23 }
 0xfc1   :  { %6317 = vmatprep.subr.bf16.mxu1 %v6661_v11  ;;  %5476 = vmatprep.mubr.msk.f32.mxu1 %vm6660_vm1, %v6659_v2 }
 0xfc3   :  { %6307 = vmatpush3.bf16.msra.mxu0 %v7028_v63 }
 0xfc4   :  { %6308 = vmatprep.subr.bf16.mxu0 %v6661_v11  ;;  %6319 = vmatpush3.bf16.msra.mxu1 %v7067_v27 }
 0xfc5   :  { %6320 = vmatprep.subr.bf16.mxu1 %v6661_v11 }
 0xfc7   :  { %6310 = vmatpush3.bf16.msra.mxu0 %v7037_v7 }
 0xfc8   :  { %6311 = vmatprep.subr.bf16.mxu0 %v6661_v11  ;;  %6322 = vmatpush3.bf16.msra.mxu1 %v7077_v38 }
 0xfc9   :  { %6323 = vmatprep.subr.bf16.mxu1 %v6661_v11 }
 0xfcb   :  { %6313 = vmatpush3.bf16.msra.mxu0 %v7047_v13 }
 0xfcc   :  { %6325 = vmatpush3.bf16.msra.mxu1 %v7106_v8  ;;  %6326 = vmatprep.subr.bf16.mxu0 %v6661_v11 }
 0xfcd   :  { %6338 = vmatprep.subr.bf16.mxu1 %v6661_v11 }
0x1091   :  { %v2083_v21 = vpop.f32.mrb[28].mxu0  ;;  %v2159_v47 = vpop.f32.mrb[28].mxu1 }
0x1092   :  { %v2160_v16 = vadd.f32 %v7085_v41, %v2159_v47  ;;  %v5405_v59 = vpop.f32.mrb[29].mxu0  ;;  %v5440_v44 = vpop.f32.mrb[29].mxu1  ;;  %v2791_v47 = vld [vmem:[%s7977_s2 + $0x268] sm:$0xff] }
0x1093   :  { %v2793_v44 = vld [vmem:[%s7977_s2 + $0x278] sm:$0xff] }
0x1094   :  { %v4251_v62 = vmul.f32 -1.442695, %v2160_v16  ;;  %v2792_v16 = vld [vmem:[%s7977_s2 + $0x270] sm:$0xff] }
0x1096   :  { %6624 = vpow2.f32 %v4251_v62  ;;  %v6426_v62 = vpack.c.bf16 %v2793_v44, %v2792_v16  ;;  %v3060_v44 = vld [vmem:[%s7977_s2 + $0x438] sm:$0xff] }
0x10a0   :  { %v6625_v4 = vpop.eup %6624 }
0x10a1   :  { %v2166_v5 = vadd.f32 1.0, %v6625_v4  ;;  %v2794_v4 = vld [vmem:[%s7977_s2 + $0x280] sm:$0xff] }
0x10a3   :  { %6626 = vrcp.f32 %v2166_v5  ;;  %v2795_v5 = vld [vmem:[%s7977_s2 + $0x288] sm:$0xff] }
0x10ad   :  { %v6627_v37 = vpop.eup %6626 }
0x10ae   :  { %v2169_v12 = vmul.f32 %v6627_v37, %v7395_v53  ;;  %v6429_v37 = vpack.c.bf16 %v2795_v5, %v2794_v4  ;;  %v3062_v5 = vld [vmem:[%s7977_s2 + $0x448] sm:$0xff] }
0x10b0   :  { %5458 = vmatmul.mubr.msk.f32.vlgmr.msra.gmra.mrb[30].mxu0 %vm422_vm4, %v2169_v12  ;;  %v2796_v12 = vld [vmem:[%s7977_s2 + $0x290] sm:$0xff] }
0x10b1   :  { %6328 = vmatpush3.bf16.msra.mxu0 %v6733_v10  ;;  %5495 = vmatprep.mubr.msk.f32.mxu0 %vm6660_vm1, %v6659_v2 }
0x10b2   :  { %6329 = vmatprep.subr.bf16.mxu0 %v6661_v11 }
0x10b5   :  { %6331 = vmatpush3.bf16.msra.mxu0 %v6747_v15  ;;  %v2084_v15 = vadd.f32 %v7134_v29, %v2083_v21  ;;  %v2703_v29 = vld [vmem:[%s7977_s2 + $0x218] sm:$0xff]  ;;  %v2790_v21 = vld [vmem:[%s7977_s2 + $0x260] sm:$0xff] }
0x10b6   :  { %6332 = vmatprep.subr.bf16.mxu0 %v6661_v11  ;;  %v6423_v59 = vpack.c.bf16 %v2791_v47, %v2790_v21 }
0x10b9   :  { %6334 = vmatpush3.bf16.msra.mxu0 %v6765_v20  ;;  %v4250_v20 = vmul.f32 -1.442695, %v2084_v15 }
0x10ba   :  { %6335 = vmatprep.subr.bf16.mxu0 %v6661_v11 }
0x10bb   :  { %6628 = vpow2.f32 %v4250_v20  ;;  %v6642_v20 = vld [vmem:[%s7977_s2 + $0xe8] ss:$0 sm:$0xff] }
0x10bd   :  { %6337 = vmatpush3.bf16.msra.mxu0 %v6781_v24 }
0x10be   :  { %6362 = vmatprep.subr.bf16.mxu0 %v6661_v11 }
0x10c5   :  { %v6629_v24 = vpop.eup %6628 }
0x1183   :  { %v2239_v41 = vpop.f32.mrb[30].mxu0 }
0x1184   :  { %v2240_v10 = vadd.f32 %v2239_v41, %v7000_v46  ;;  %v5459_v32 = vpop.f32.mrb[31].mxu0  ;;  %v2797_v41 = vld [vmem:[%s7977_s2 + $0x298] sm:$0xff] }
0x1185   :  { %v2798_v32 = vld [vmem:[%s7977_s2 + $0x2a0] sm:$0xff] }
0x1186   :  { %v2243_v56 = vmax.f32 %v2240_v10, 0.0  ;;  %v6432_v10 = vpack.c.bf16 %v2797_v41, %v2796_v12  ;;  %v3064_v41 = vld [vmem:[%s7977_s2 + $0x458] sm:$0x3] }
0x1188   :  { %5477 = vmatmul.mubr.msk.f32.vlgmr.msra.gmra.mrb[30].mxu1 %vm422_vm4, %v2243_v56  ;;  %v2799_v56 = vld [vmem:[%s7977_s2 + $0x2a8] sm:$0xff] }
0x1189   :  { %6340 = vmatpush3.bf16.msra.mxu1 %v6799_v30  ;;  %5530 = vmatprep.mubr.msk.f32.mxu1 %vm6660_vm1, %v6659_v2  ;;  %v2090_v30 = vadd.f32 1.0, %v6629_v24  ;;  %v6435_v15 = vpack.c.bf16 %v2799_v56, %v2798_v32  ;;  %v3157_v32 = vld [vmem:[%s7977_s2 + $0x2d0] sm:$0xff]  ;;  %v3158_v56 = vld [vmem:[%s7977_s2 + $0x2d8] sm:$0xff] }
0x118a   :  { %6341 = vmatprep.subr.bf16.mxu1 %v6661_v11 }
0x118b   :  { %6630 = vrcp.f32 %v2090_v30 }
0x118d   :  { %6343 = vmatpush3.bf16.msra.mxu1 %v6810_v33 }
0x118e   :  { %6344 = vmatprep.subr.bf16.mxu1 %v6661_v11 }
0x1191   :  { %6346 = vmatpush3.bf16.msra.mxu1 %v6822_v36 }
0x1192   :  { %6347 = vmatprep.subr.bf16.mxu1 %v6661_v11 }
0x1195   :  { %6349 = vmatpush3.bf16.msra.mxu1 %v6834_v39  ;;  %v6631_v36 = vpop.eup %6630 }
0x1196   :  { %6350 = vmatprep.subr.bf16.mxu1 %v6661_v11  ;;  %v2321_v17 = vmul.f32 %v6631_v36, %v7395_v53 }
0x1199   :  { %6352 = vmatpush3.bf16.msra.mxu1 %v6846_v42 }
0x119a   :  { %6353 = vmatprep.subr.bf16.mxu1 %v6661_v11 }
0x119d   :  { %6355 = vmatpush3.bf16.msra.mxu1 %v6856_v45 }
0x119e   :  { %6356 = vmatprep.subr.bf16.mxu1 %v6661_v11 }
0x11a1   :  { %6358 = vmatpush3.bf16.msra.mxu1 %v6867_v48  ;;  %v2319_v48 = vsub.f32 1.0, %v6631_v36 }
0x11a2   :  { %6359 = vmatprep.subr.bf16.mxu1 %v6661_v11 }
0x11a5   :  { %6361 = vmatpush3.bf16.msra.mxu1 %v6969_v26 }
0x11a6   :  { %6386 = vmatprep.subr.bf16.mxu1 %v6661_v11 }
0x125b   :  { %v2313_v33 = vpop.f32.mrb[30].mxu1 }
0x125c   :  { %v2314_v39 = vadd.f32 %v7140_v51, %v2313_v33  ;;  %v5478_v42 = vpop.f32.mrb[31].mxu1  ;;  %v2704_v51 = vld [vmem:[%s7977_s2 + $0x220] sm:$0xff] }
0x125d   :  { %v6411_v25 = vpack.c.bf16 %v2704_v51, %v2703_v29  ;;  %v2969_v29 = vld [vmem:[%s7977_s2 + $0x3f8] sm:$0xff] }
0x125e   :  { %v2317_v45 = vand.u32 2147483647, %v2314_v39 }
0x1260   :  { %v2318_v46 = vsel %vm421_vm5, %v2317_v45, %v2314_v39  ;;  %v6643_v45 = vld [vmem:[%s7977_s2 + $0x210] ss:$0 sm:$0xff] }
0x1261   :  { %v2320_v26 = vmul.f32 %v2319_v48, %v2318_v46 }
0x1263   :  { %v7477_v61 = vadd.f32 %v2321_v17, %v2320_v26 }
0x1265   :  { %5496 = vmatmul.mubr.msk.f32.vlgmr.msra.gmra.mrb[32].mxu0 %vm422_vm4, %v7477_v61 }
0x1266   :  { %6364 = vmatpush3.bf16.msra.mxu0 %v6880_v55  ;;  %5565 = vmatprep.mubr.msk.f32.mxu0 %vm6660_vm1, %v6659_v2  ;;  %v6640_v55 = vld [vmem:[%s7977_s2 + $0x60] ss:$0 sm:$0xff] }
0x1267   :  { %6365 = vmatprep.subr.bf16.mxu0 %v6661_v11 }
0x126a   :  { %6367 = vmatpush3.bf16.msra.mxu0 %v6895_v60  ;;  %v243_v60 = vadd.f32 %v6640_v55, %v6956_v19 }
0x126b   :  { %6368 = vmatprep.subr.bf16.mxu0 %v6661_v11 }
0x126e   :  { %6370 = vmatpush3.bf16.msra.mxu0 %v6909_v1 }
0x126f   :  { %6371 = vmatprep.subr.bf16.mxu0 %v6661_v11 }
0x1272   :  { %6373 = vmatpush3.bf16.msra.mxu0 %v6921_v6 }
0x1273   :  { %6374 = vmatprep.subr.bf16.mxu0 %v6661_v11 }
0x1276   :  { %6376 = vmatpush3.bf16.msra.mxu0 %v6931_v9 }
0x1277   :  { %6377 = vmatprep.subr.bf16.mxu0 %v6661_v11 }
0x127a   :  { %6379 = vmatpush3.bf16.msra.mxu0 %v6941_v14 }
0x127b   :  { %6380 = vmatprep.subr.bf16.mxu0 %v6661_v11 }
0x127e   :  { %6382 = vmatpush3.bf16.msra.mxu0 %v6951_v18 }
0x127f   :  { %6383 = vmatprep.subr.bf16.mxu0 %v6661_v11 }
0x1282   :  { %6385 = vmatpush3.bf16.msra.mxu0 %v6974_v28  ;;  %v6641_v28 = vld [vmem:[%s7977_s2 + $0x170] ss:$0 sm:$0xff] }
0x1283   :  { %6398 = vmatprep.subr.bf16.mxu0 %v6661_v11 }
0x1338   :  { %v2392_v1 = vpop.f32.mrb[32].mxu0 }
0x1339   :  { %v2393_v6 = vadd.f32 %v2392_v1, %v243_v60  ;;  %v5497_v9 = vpop.f32.mrb[33].mxu0 }
0x133a   :  { %v2800_v9 = vld [vmem:[%s7977_s2 + $0x2b0] sm:$0xff] }
0x133b   :  { %v2396_v14 = vmax.f32 %v2393_v6, 0.0 }
0x133d   :  { %5531 = vmatmul.mubr.f32.vlgmr.msra.gmra.mrb[32].mxu1 %v2396_v14  ;;  %5566 = vmatmul.mubr.f32.vlgmr.msra.gmra.mrb[34].mxu0 %v2396_v14  ;;  %v2801_v14 = vld [vmem:[%s7977_s2 + $0x2b8] sm:$0xff] }
0x133e   :  { %6388 = vmatpush3.bf16.msra.mxu1 %v7018_v58  ;;  %5584 = vmatprep.mubr.msk.f32.mxu1 %vm6660_vm1, %v6659_v2 }
0x133f   :  { %6389 = vmatprep.subr.bf16.mxu1 %v6661_v11  ;;  %6400 = vmatpush3.bf16.msra.mxu0 %v7061_v23 }
0x1340   :  { %6401 = vmatprep.subr.bf16.mxu0 %v6661_v11  ;;  %5603 = vmatprep.mubr.msk.f32.mxu0 %vm6660_vm1, %v6659_v2 }
0x1342   :  { %6391 = vmatpush3.bf16.msra.mxu1 %v7028_v63 }
0x1343   :  { %6392 = vmatprep.subr.bf16.mxu1 %v6661_v11  ;;  %6403 = vmatpush3.bf16.msra.mxu0 %v7067_v27 }
0x1344   :  { %6404 = vmatprep.subr.bf16.mxu0 %v6661_v11 }
0x1346   :  { %6394 = vmatpush3.bf16.msra.mxu1 %v7037_v7 }
0x1347   :  { %6395 = vmatprep.subr.bf16.mxu1 %v6661_v11  ;;  %6406 = vmatpush3.bf16.msra.mxu0 %v7077_v38 }
0x1348   :  { %6407 = vmatprep.subr.bf16.mxu0 %v6661_v11 }
0x134a   :  { %6397 = vmatpush3.bf16.msra.mxu1 %v7047_v13 }
0x134b   :  { %6409 = vmatpush3.bf16.msra.mxu0 %v7106_v8  ;;  %6410 = vmatprep.subr.bf16.mxu1 %v6661_v11 }
0x134c   :  { %6422 = vmatprep.subr.bf16.mxu0 %v6661_v11 }
0x1410   :  { %v7523_v18 = vpop.f32.mrb[32].mxu1  ;;  %v2539_v19 = vpop.f32.mrb[34].mxu0 }
0x1411   :  { %v2540_v58 = vadd.f32 %v6641_v28, %v2539_v19  ;;  %v5532_v63 = vpop.f32.mrb[33].mxu1  ;;  %v5567_v7 = vpop.f32.mrb[35].mxu0  ;;  %v2464_v24 = vadd.f32 %v6642_v20, %v7523_v18  ;;  %v6438_v18 = vpack.c.bf16 %v2801_v14, %v2800_v9  ;;  %v4259_v19 = vld [vmem:[%s7977_s2 + $0x258] ss:$0 sm:$0xff]  ;;  %v2886_v28 = vld [vmem:[%s7977_s2 + $0x3d0] sm:$0xff] }
0x1412   :  { %v3177_v9 = vld [vmem:[%s7977_s2 + $0x330] sm:$0xff]  ;;  %v3178_v14 = vld [vmem:[%s7977_s2 + $0x338] sm:$0xff] }
0x1413   :  { %v4256_v23 = vmul.f32 -1.442695, %v2540_v58  ;;  %v4255_v30 = vmul.f32 -1.442695, %v2464_v24  ;;  %v2887_v58 = vld [vmem:[%s7977_s2 + $0x3d8] sm:$0xff] }
0x1415   :  { %6632 = vpow2.f32 %v4256_v23 }
0x141f   :  { %v6633_v27 = vpop.eup %6632 }
0x1420   :  { %v2546_v13 = vadd.f32 1.0, %v6633_v27  ;;  %v6441_v27 = vpack.c.bf16 %v2887_v58, %v2886_v28  ;;  %v3181_v58 = vld [vmem:[%s7977_s2 + $0x350] sm:$0xff] }
0x1422   :  { %6634 = vrcp.f32 %v2546_v13 }
0x1423   :  { %6636 = vpow2.f32 %v4255_v30  ;;  %v7711_v30 = vpack.c.bf16 %v3158_v56, %v3157_v32 }
0x142c   :  { %v6635_v38 = vpop.eup %6634 }
0x142d   :  { %v2549_v8 = vmul.f32 %v6635_v38, %v7477_v61  ;;  %v6637_v33 = vpop.eup %6636  ;;  %v2967_v38 = vld [vmem:[%s7977_s2 + $0x3e8] sm:$0xff] }
0x142e   :  { %v2470_v36 = vadd.f32 1.0, %v6637_v33 }
0x142f   :  { %5585 = vmatmul.mubr.msk.f32.vlgmr.msra.gmra.mrb[34].mxu1 %vm422_vm4, %v2549_v8  ;;  %v2968_v8 = vld [vmem:[%s7977_s2 + $0x3f0] sm:$0xff] }
0x1430   :  { %5622 = vmatprep.mubr.msk.f32.mxu1 %vm6660_vm1, %v6659_v2  ;;  %6412 = vmatpush3.bf16.msra.mxu1 %v6411_v25  ;;  %6638 = vrcp.f32 %v2470_v36  ;;  %v6444_v51 = vpack.c.bf16 %v2968_v8, %v2967_v38  ;;  %v6447_v25 = vpack.c.bf16 %v2970_v3, %v2969_v29  ;;  %v3164_v36 = vld [vmem:[%s7977_s2 + $0x2e8] sm:$0xff]  ;;  %v3183_v3 = vld [vmem:[%s7977_s2 + $0x360] sm:$0xff] }
0x1431   :  { %6413 = vmatprep.subr.bf16.mxu1 %v6661_v11 }
0x1434   :  { %6415 = vmatpush3.bf16.msra.mxu1 %v6414_v31 }
0x1435   :  { %6416 = vmatprep.subr.bf16.mxu1 %v6661_v11 }
0x1438   :  { %6418 = vmatpush3.bf16.msra.mxu1 %v6417_v40  ;;  %v4264_v40 = vld [vmem:[%s7977_s2 + $0x3e0] ss:$0 sm:$0xff] }
0x1439   :  { %6419 = vmatprep.subr.bf16.mxu1 %v6661_v11 }
0x143a   :  { %v6639_v42 = vpop.eup %6638 }
0x143b   :  { %v2699_v17 = vsub.f32 1.0, %v6639_v42  ;;  %v2701_v1 = vmul.f32 %v6639_v42, %v7477_v61  ;;  %v2802_v61 = vld [vmem:[%s7977_s2 + $0x2c0] sm:$0xf] }
0x1502   :  { %v2619_v35 = vpop.f32.mrb[34].mxu1 }
0x1503   :  { %v2620_v49 = vadd.f32 %v2619_v35, %v6997_v43  ;;  %v5586_v50 = vpop.f32.mrb[35].mxu1  ;;  %v2709_v43 = vld [vmem:[%s7977_s2 + $0x248] sm:$0xff] }
0x1504   :  { %v6420_v57 = vpack.c.bf16 %v2710_v54, %v2709_v43  ;;  %v2971_v50 = vld [vmem:[%s7977_s2 + $0x408] sm:$0xff]  ;;  %v3059_v54 = vld [vmem:[%s7977_s2 + $0x430] sm:$0xff] }
0x1505   :  { %v2623_v53 = vmax.f32 %v2620_v49, 0.0  ;;  %v3058_v43 = vld [vmem:[%s7977_s2 + $0x428] sm:$0xff] }
0x1506   :  { %6421 = vmatpush3.bf16.msra.mxu1 %v6420_v57  ;;  %v6453_v16 = vpack.c.bf16 %v3059_v54, %v3058_v43  ;;  %v3409_v43 = vstv %s3335_s10 }
0x1507   :  { %5604 = vmatmul.mubr.msk.f32.vlgmr.msra.gmra.mrb[36].mxu0 %vm422_vm4, %v2623_v53  ;;  %6443 = vmatprep.subr.bf16.mxu1 %v6661_v11  ;;  %v2972_v53 = vld [vmem:[%s7977_s2 + $0x410] sm:$0xff] }
0x1508   :  { %5651 = vmatprep.mubr.msk.f32.mxu0 %vm6660_vm1, %v6659_v2  ;;  %6424 = vmatpush3.bf16.msra.mxu0 %v6423_v59  ;;  %v6450_v22 = vpack.c.bf16 %v2972_v53, %v2971_v50 }
0x1509   :  { %6425 = vmatprep.subr.bf16.mxu0 %v6661_v11 }
0x150c   :  { %6427 = vmatpush3.bf16.msra.mxu0 %v6426_v62  ;;  %v3061_v62 = vld [vmem:[%s7977_s2 + $0x440] sm:$0xff] }
0x150d   :  { %6428 = vmatprep.subr.bf16.mxu0 %v6661_v11  ;;  %v6456_v4 = vpack.c.bf16 %v3061_v62, %v3060_v44 }
0x1510   :  { %6430 = vmatpush3.bf16.msra.mxu0 %v6429_v37  ;;  %v3063_v37 = vld [vmem:[%s7977_s2 + $0x450] sm:$0xff] }
0x1511   :  { %6431 = vmatprep.subr.bf16.mxu0 %v6661_v11  ;;  %v6459_v12 = vpack.c.bf16 %v3063_v37, %v3062_v5 }
0x1514   :  { %6433 = vmatpush3.bf16.msra.mxu0 %v6432_v10  ;;  %v4266_v10 = vld [vmem:[%s7977_s2 + $0x420] ss:$0 sm:$0xff] }
0x1515   :  { %6434 = vmatprep.subr.bf16.mxu0 %v6661_v11 }
0x1518   :  { %6436 = vmatpush3.bf16.msra.mxu0 %v6435_v15 }
0x1519   :  { %6437 = vmatprep.subr.bf16.mxu0 %v6661_v11 }
0x151c   :  { %6439 = vmatpush3.bf16.msra.mxu0 %v6438_v18  ;;  %v3179_v18 = vld [vmem:[%s7977_s2 + $0x340] sm:$0xff] }
0x151d   :  { %5649 = vmatprep.subr.mxu0 %v6659_v2 }
0x1520   :  { %5650 = vmatpush3.msk.msra.mxu0 %vm2812_vm6, %v2802_v61  ;;  %v7771_v61 = vpack.c.bf16 %v3178_v14, %v3177_v9 }
0x1521   :  { %6440 = vmatprep.subr.bf16.mxu0 %v6661_v11 }
0x15da   :  { %v2693_v39 = vpop.f32.mrb[36].mxu0 }
0x15db   :  { %v2694_v48 = vadd.f32 %v6643_v45, %v2693_v39  ;;  %v5605_v46 = vpop.f32.mrb[37].mxu0  ;;  %v3165_v39 = vld [vmem:[%s7977_s2 + $0x2f0] sm:$0xff]  ;;  %v3166_v45 = vld [vmem:[%s7977_s2 + $0x2f8] sm:$0xff] }
0x15dc   :  { %v7723_v42 = vpack.c.bf16 %v3165_v39, %v3164_v36 }
0x15dd   :  { %v2697_v26 = vand.u32 2147483647, %v2694_v48 }
0x15df   :  { %v2698_v55 = vsel %vm421_vm5, %v2697_v26, %v2694_v48  ;;  %v3167_v48 = vld [vmem:[%s7977_s2 + $0x300] sm:$0xff]  ;;  %v3168_v26 = vld [vmem:[%s7977_s2 + $0x308] sm:$0xff] }
0x15e0   :  { %v2700_v60 = vmul.f32 %v2699_v17, %v2698_v55  ;;  %v7735_v46 = vpack.c.bf16 %v3167_v48, %v3166_v45  ;;  %v3169_v17 = vld [vmem:[%s7977_s2 + $0x310] sm:$0xff] }
0x15e1   :  { %v7748_v55 = vpack.c.bf16 %v3169_v17, %v3168_v26 }
0x15e2   :  { %v2702_v6 = vadd.f32 %v2701_v1, %v2700_v60  ;;  %v3170_v60 = vld [vmem:[%s7977_s2 + $0x318] sm:$0xff]  ;;  %v3171_v1 = vld [vmem:[%s7977_s2 + $0x320] sm:$0xff] }
0x15e4   :  { %5623 = vmatmul.mubr.msk.f32.vlgmr.msra.gmra.mrb[36].mxu1 %vm422_vm4, %v2702_v6  ;;  %v7758_v6 = vpack.c.bf16 %v3171_v1, %v3170_v60 }
0x15e5   :  { %5675 = vmatprep.mubr.msk.f32.mxu1 %vm6660_vm1, %v6659_v2  ;;  %6445 = vmatpush3.bf16.msra.mxu1 %v6444_v51 }
0x15e6   :  { %6446 = vmatprep.subr.bf16.mxu1 %v6661_v11 }
0x15e9   :  { %6448 = vmatpush3.bf16.msra.mxu1 %v6447_v25  ;;  %v3184_v25 = vld [vmem:[%s7977_s2 + $0x368] sm:$0xff] }
0x15ea   :  { %6449 = vmatprep.subr.bf16.mxu1 %v6661_v11 }
0x15ed   :  { %6451 = vmatpush3.bf16.msra.mxu1 %v6450_v22 }
0x15ee   :  { %5673 = vmatprep.subr.mxu1 %v6659_v2 }
0x15f1   :  { %5674 = vmatpush3.msk.msra.mxu1 %vm2983_vm8, %v2973_v0  ;;  %v7835_v0 = vld [vmem:[%s7977_s2 + $0x370] ss:$0 sm:$0xff] }
0x15f2   :  { %6452 = vmatprep.subr.bf16.mxu1 %v6661_v11 }
0x16b7   :  { %v2785_v63 = vpop.f32.mrb[36].mxu1 }
0x16b8   :  { %v2786_v7 = vadd.f32 %v4259_v19, %v2785_v63  ;;  %v5624_v23 = vpop.f32.mrb[37].mxu1  ;;  %v3180_v19 = vld [vmem:[%s7977_s2 + $0x348] sm:$0xff]  ;;  %v3182_v63 = vld [vmem:[%s7977_s2 + $0x358] sm:$0xff] }
0x16b9   :  { %v7777_v28 = vpack.c.bf16 %v3180_v19, %v3179_v18 }
0x16ba   :  { %v2789_v13 = vmax.f32 %v2786_v7, 0.0  ;;  %v7787_v7 = vpack.c.bf16 %v3182_v63, %v3181_v58 }
0x16bc   :  { %5652 = vmatmul.mubr.msk.f32.vlgmr.msra.gmra.mrb[38].mxu0 %vm2808_vm7, %v2789_v13  ;;  %v7797_v13 = vld [vmem:[%s7977_s2 + $0x2e0] ss:$0 sm:$0xff] }
0x16bd   :  { %6442 = vmatpush3.bf16.msra.mxu0 %v6441_v27  ;;  %5658 = vmatprep.mubr.msk.f32.mxu0 %vm6660_vm1, %v6659_v2 }
0x16be   :  { %6476 = vmatprep.subr.bf16.mxu0 %v6661_v11 }
0x178f   :  { %v2882_v31 = vpop.f32.mrb[38].mxu0 }
0x1790   :  { %v7652_v35 = vadd.f32 %v4261_v34, %v2882_v31  ;;  %v5653_v49 = vpop.f32.mrb[39].mxu0  ;;  %v7811_v34 = vpack.c.bf16 %v3184_v25, %v3183_v3  ;;  %v7818_v31 = vld [vmem:[%s7977_s2 + $0x328] ss:$0 sm:$0xff] }
0x1791   :  { %v4109_v25 = vld [vmem:[%s7977_s2 + $0x388] sm:$0xff] }
0x1792   :  { %5659 = vmatmul.mubr.msk.f32.vlgmr.msra.gmra.mrb[40].mxu0 %vm132_vm3, %v7652_v35  ;;  %v3147_v48 = vand.u32 2147483647, %v7652_v35 }
0x1793   :  { %5737 = vmatprep.mubr.msk.f32.mxu0 %vm6660_vm1, %v6659_v2  ;;  %6478 = vmatpush3.bf16.msra.mxu0 %v7771_v61 }
0x1794   :  { %6479 = vmatprep.subr.bf16.mxu0 %v6661_v11  ;;  %v3148_v17 = vsel %vm3146_vm11, %v3147_v48, %v7652_v35 }
0x1797   :  { %6481 = vmatpush3.bf16.msra.mxu0 %v7777_v28 }
0x1798   :  { %6482 = vmatprep.subr.bf16.mxu0 %v6661_v11 }
0x179b   :  { %6484 = vmatpush3.bf16.msra.mxu0 %v7787_v7 }
0x179c   :  { %6485 = vmatprep.subr.bf16.mxu0 %v6661_v11 }
0x179f   :  { %6487 = vmatpush3.bf16.msra.mxu0 %v7811_v34 }
0x17a0   :  { %6491 = vmatprep.subr.bf16.mxu0 %v6661_v11 }
0x1865   :  { %v2962_v57 = vpop.f32.mrb[40].mxu0 }
0x1866   :  { %v2963_v21 = vadd.f32 %v4264_v40, %v2962_v57  ;;  %v5660_v47 = vpop.f32.mrb[41].mxu0 }
0x1868   :  { %v2966_v59 = vmax.f32 %v2963_v21, 0.0 }
0x186a   :  { %5676 = vmatmul.mubr.msk.f32.vlgmr.msra.gmra.mrb[38].mxu1 %vm2979_vm9, %v2966_v59 }
0x186b   :  { %6454 = vmatpush3.bf16.msra.mxu1 %v6453_v16  ;;  %5692 = vmatprep.mubr.msk.f32.mxu1 %vm6660_vm1, %v6659_v2 }
0x186c   :  { %6455 = vmatprep.subr.bf16.mxu1 %v6661_v11 }
0x186f   :  { %6457 = vmatpush3.bf16.msra.mxu1 %v6456_v4 }
0x1870   :  { %6458 = vmatprep.subr.bf16.mxu1 %v6661_v11 }
0x1873   :  { %6460 = vmatpush3.bf16.msra.mxu1 %v6459_v12 }
0x1874   :  { %5690 = vmatprep.subr.mxu1 %v6659_v2 }
0x1877   :  { %5691 = vmatpush3.msk.msra.mxu1 %vm2983_vm8, %v3064_v41 }
0x1878   :  { %6461 = vmatprep.subr.bf16.mxu1 %v6661_v11 }
0x193d   :  { %v3053_v15 = vpop.f32.mrb[38].mxu1 }
0x193e   :  { %v3054_v20 = vadd.f32 %v4266_v10, %v3053_v15  ;;  %v5677_v24 = vpop.f32.mrb[39].mxu1  ;;  %v3634_v10 = vstv %s4280_s12  ;;  %s4288_s12 = sld [smem:[#allocation2 + $0x3]] }
0x193f   :  { %v4269_v24 = vld [vmem:[%s7977_s2 + $0x460] ss:$0 sm:$0xff] }
0x1940   :  { %v3057_v33 = vmax.f32 %v3054_v20, 0.0 }
0x1942   :  { %5693 = vmatmul.mubr.msk.f32.vlgmr.msra.gmra.mrb[40].mxu1 %vm2979_vm9, %v3057_v33 }
0x1943   :  { %6463 = vmatpush3.bf16.msra.mxu1 %v7711_v30  ;;  %5699 = vmatprep.mubr.msk.f32.mxu1 %vm6660_vm1, %v6659_v2 }
0x1944   :  { %6464 = vmatprep.subr.bf16.mxu1 %v6661_v11 }
0x1946   :  { %5700 = vmatmul.mubr.msk.f32.vlgmr.msra.gmra.mrb[42].mxu1 %vm132_vm3, %v7652_v35 }
0x1947   :  { %6466 = vmatpush3.bf16.msra.mxu1 %v7723_v42  ;;  %5718 = vmatprep.mubr.msk.f32.mxu1 %vm6660_vm1, %v6659_v2 }
0x1948   :  { %6467 = vmatprep.subr.bf16.mxu1 %v6661_v11 }
0x194b   :  { %6469 = vmatpush3.bf16.msra.mxu1 %v7735_v46 }
0x194c   :  { %6470 = vmatprep.subr.bf16.mxu1 %v6661_v11 }
0x194f   :  { %6472 = vmatpush3.bf16.msra.mxu1 %v7748_v55 }
0x1950   :  { %6473 = vmatprep.subr.bf16.mxu1 %v6661_v11 }
0x1953   :  { %6475 = vmatpush3.bf16.msra.mxu1 %v7758_v6 }
0x1954   :  { %6488 = vmatprep.subr.bf16.mxu1 %v6661_v11 }
0x1a15   :  { %v7792_v23 = vpop.f32.mrb[40].mxu1 }
0x1a16   :  { %v5694_v27 = vpop.f32.mrb[41].mxu1  ;;  %v3143_v33 = vadd.f32 %v4269_v24, %v7792_v23 }
0x1a19   :  { %v3256_v38 = vpop.f32.mrb[42].mxu1 }
0x1a1a   :  { %v3257_v8 = vadd.f32 %v7797_v13, %v3256_v38  ;;  %v5701_v29 = vpop.f32.mrb[43].mxu1 }
0x1a1c   :  { %v3260_v51 = vmax.f32 %v3257_v8, 0.0 }
0x1a1e   :  { %5719 = vmatmul.mubr.msk.f32.vlgmr.msra.gmra.mrb[44].mxu1 %vm422_vm4, %v3260_v51 }
0x1a1f   :  { %6490 = vmatpush3.bf16.msra.mxu1 %v7711_v30  ;;  %5744 = vmatprep.mubr.msk.f32.mxu1 %vm6660_vm1, %v6659_v2 }
0x1a20   :  { %6503 = vmatprep.subr.bf16.mxu1 %v6661_v11 }
0x1af1   :  { %v3330_v49 = vpop.f32.mrb[44].mxu1 }
0x1af2   :  { %v3331_v50 = vadd.f32 %v7818_v31, %v3330_v49  ;;  %v5720_v53 = vpop.f32.mrb[45].mxu1  ;;  %v4111_v49 = vld [vmem:[%s7977_s2 + $0x398] sm:$0xff] }
0x1af4   :  { %v3334_v22 = vmax.f32 %v3331_v50, 0.0  ;;  %v4112_v50 = vld [vmem:[%s7977_s2 + $0x3a0] sm:$0xff] }
0x1af5   :  { %v6576_v53 = vpack.c.bf16 %v4112_v50, %v4111_v49 }
0x1af6   :  { %5738 = vmatmul.mubr.msk.f32.vlgmr.msra.gmra.mrb[42].mxu0 %vm422_vm4, %v3334_v22  ;;  %v4113_v22 = vld [vmem:[%s7977_s2 + $0x3a8] sm:$0xff] }
0x1af7   :  { %6493 = vmatpush3.bf16.msra.mxu0 %v7723_v42  ;;  %5763 = vmatprep.mubr.msk.f32.mxu0 %vm6660_vm1, %v6659_v2 }
0x1af8   :  { %6494 = vmatprep.subr.bf16.mxu0 %v6661_v11 }
0x1afb   :  { %6496 = vmatpush3.bf16.msra.mxu0 %v7735_v46 }
0x1afc   :  { %6497 = vmatprep.subr.bf16.mxu0 %v6661_v11 }
0x1aff   :  { %6499 = vmatpush3.bf16.msra.mxu0 %v7748_v55 }
0x1b00   :  { %6500 = vmatprep.subr.bf16.mxu0 %v6661_v11 }
0x1b03   :  { %6502 = vmatpush3.bf16.msra.mxu0 %v7758_v6 }
0x1b04   :  { %6515 = vmatprep.subr.bf16.mxu0 %v6661_v11 }
0x1bc9   :  { %v3405_v40 = vpop.f32.mrb[42].mxu0 }
0x1bca   :  { %v3406_v54 = vadd.f32 %v7835_v0, %v3405_v40  ;;  %v5739_v57 = vpop.f32.mrb[43].mxu0  ;;  %v4114_v40 = vld [vmem:[%s7977_s2 + $0x3b0] sm:$0xff] }
0x1bcb   :  { %v4116_v57 = vld [vmem:[%s7977_s2 + $0x3c0] sm:$0xff] }
0x1bcc   :  { %v3410_v21 = vmul.f32 %v3409_v43, %v3406_v54  ;;  %v6579_v43 = vpack.c.bf16 %v4114_v40, %v4113_v22  ;;  %v4115_v54 = vld [vmem:[%s7977_s2 + $0x3b8] sm:$0xff] }
0x1bce   :  { %v3411_v47 = vadd.f32 %v3410_v21, %v7652_v35  ;;  %v6582_v21 = vpack.c.bf16 %v4116_v57, %v4115_v54 }
0x1bd0   :  { %4087 = vrot.lane.b32.xlu0 %v3411_v47, %s6662_s11  ;;  %5745 = vmatmul.mubr.msk.f32.vlgmr.msra.gmra.mrb[46].mxu1 %vm132_vm3, %v3411_v47 }
0x1bd1   :  { %6505 = vmatpush3.bf16.msra.mxu1 %v7771_v61  ;;  %5782 = vmatprep.mubr.msk.f32.mxu1 %vm6660_vm1, %v6659_v2 }
0x1bd2   :  { %6506 = vmatprep.subr.bf16.mxu1 %v6661_v11 }
0x1bd5   :  { %6508 = vmatpush3.bf16.msra.mxu1 %v7777_v28 }
0x1bd6   :  { %6509 = vmatprep.subr.bf16.mxu1 %v6661_v11 }
0x1bd9   :  { %6511 = vmatpush3.bf16.msra.mxu1 %v7787_v7 }
0x1bda   :  { %6512 = vmatprep.subr.bf16.mxu1 %v6661_v11 }
0x1bdd   :  { %6514 = vmatpush3.bf16.msra.mxu1 %v7811_v34 }
0x1bde   :  { %6518 = vmatprep.subr.bf16.mxu1 %v6661_v11 }
0x1c42   :  { %v4088_v36 = vpop.permute.xlu0 %4087 }
0x1c43   :  { %v4100_v39 = vsel %vm132_vm3, %v7652_v35, %v4088_v36 }
0x1ca3   :  { %v3481_v16 = vpop.f32.mrb[46].mxu1 }
0x1ca4   :  { %v3482_v59 = vadd.f32 %v7797_v13, %v3481_v16  ;;  %v5746_v44 = vpop.f32.mrb[47].mxu1  ;;  %v4084_v16 = vstv %s4288_s12 }
0x1ca6   :  { %v3485_v62 = vmax.f32 %v3482_v59, 0.0 }
0x1ca8   :  { %5764 = vmatmul.mubr.msk.f32.vlgmr.msra.gmra.mrb[44].mxu0 %vm422_vm4, %v3485_v62 }
0x1ca9   :  { %6517 = vmatpush3.bf16.msra.mxu0 %v7711_v30  ;;  %5789 = vmatprep.mubr.msk.f32.mxu0 %vm6660_vm1, %v6659_v2 }
0x1caa   :  { %6530 = vmatprep.subr.bf16.mxu0 %v6661_v11 }
0x1d7b   :  { %v3555_v4 = vpop.f32.mrb[44].mxu0 }
0x1d7c   :  { %v3556_v5 = vadd.f32 %v7818_v31, %v3555_v4  ;;  %v5765_v37 = vpop.f32.mrb[45].mxu0 }
0x1d7e   :  { %v3559_v12 = vmax.f32 %v3556_v5, 0.0 }
0x1d80   :  { %5783 = vmatmul.mubr.msk.f32.vlgmr.msra.gmra.mrb[48].mxu1 %vm422_vm4, %v3559_v12 }
0x1d81   :  { %6520 = vmatpush3.bf16.msra.mxu1 %v7723_v42  ;;  %5808 = vmatprep.mubr.msk.f32.mxu1 %vm6660_vm1, %v6659_v2 }
0x1d82   :  { %6521 = vmatprep.subr.bf16.mxu1 %v6661_v11 }
0x1d85   :  { %6523 = vmatpush3.bf16.msra.mxu1 %v7735_v46 }
0x1d86   :  { %6524 = vmatprep.subr.bf16.mxu1 %v6661_v11 }
0x1d89   :  { %6526 = vmatpush3.bf16.msra.mxu1 %v7748_v55 }
0x1d8a   :  { %6527 = vmatprep.subr.bf16.mxu1 %v6661_v11 }
0x1d8d   :  { %6529 = vmatpush3.bf16.msra.mxu1 %v7758_v6 }
0x1d8e   :  { %6542 = vmatprep.subr.bf16.mxu1 %v6661_v11 }
0x1e53   :  { %v3630_v41 = vpop.f32.mrb[48].mxu1 }
0x1e54   :  { %v3631_v32 = vadd.f32 %v7835_v0, %v3630_v41  ;;  %v5784_v56 = vpop.f32.mrb[49].mxu1 }
0x1e56   :  { %v3635_v15 = vmul.f32 %v3634_v10, %v3631_v32 }
0x1e58   :  { %v3636_v20 = vadd.f32 %v3635_v15, %v3411_v47 }
0x1e5a   :  { %4090 = vrot.lane.b32.xlu0 %v3636_v20, %s6663_s15  ;;  %5790 = vmatmul.mubr.msk.f32.vlgmr.msra.gmra.mrb[46].mxu0 %vm132_vm3, %v3636_v20 }
0x1e5b   :  { %6532 = vmatpush3.bf16.msra.mxu0 %v7771_v61  ;;  %5827 = vmatprep.mubr.msk.f32.mxu0 %vm6660_vm1, %v6659_v2 }
0x1e5c   :  { %6533 = vmatprep.subr.bf16.mxu0 %v6661_v11 }
0x1e5e   :  { %3150 = vrot.lane.b32.xlu0 %v3143_v33, %s6663_s15 }
0x1e5f   :  { %6535 = vmatpush3.bf16.msra.mxu0 %v7777_v28 }
0x1e60   :  { %6536 = vmatprep.subr.bf16.mxu0 %v6661_v11 }
0x1e63   :  { %6538 = vmatpush3.bf16.msra.mxu0 %v7787_v7 }
0x1e64   :  { %6539 = vmatprep.subr.bf16.mxu0 %v6661_v11 }
0x1e67   :  { %6541 = vmatpush3.bf16.msra.mxu0 %v7811_v34 }
0x1e68   :  { %6545 = vmatprep.subr.bf16.mxu0 %v6661_v11 }
0x1ecc   :  { %v4091_v45 = vpop.permute.xlu0 %4090 }
0x1ecd   :  { %v7887_v26 = vsel %vm3153_vm10, %v4100_v39, %v4091_v45 }
0x1ed0   :  { %v3151_v60 = vpop.permute.xlu0 %3150 }
0x1ed1   :  { %v3154_v1 = vsel %vm3153_vm10, %v3148_v17, %v3151_v60 }
0x1ed2   :  { %3156 = vst.msk [vmem:[%s7979_s4] sm:$0xff] %vm3155_vm12, %v3154_v1  ;;  %s4284_s4 = sld [smem:[#allocation2 + $0x2]] }
0x1f2d   :  { %v3706_v9 = vpop.f32.mrb[46].mxu0 }
0x1f2e   :  { %v3707_v14 = vadd.f32 %v7797_v13, %v3706_v9  ;;  %v5791_v18 = vpop.f32.mrb[47].mxu0 }
0x1f30   :  { %v3710_v19 = vmax.f32 %v3707_v14, 0.0 }
0x1f32   :  { %5809 = vmatmul.mubr.msk.f32.vlgmr.msra.gmra.mrb[50].mxu1 %vm422_vm4, %v3710_v19 }
0x1f33   :  { %6544 = vmatpush3.bf16.msra.mxu1 %v7711_v30  ;;  %5834 = vmatprep.mubr.msk.f32.mxu1 %vm6660_vm1, %v6659_v2 }
0x1f34   :  { %6557 = vmatprep.subr.bf16.mxu1 %v6661_v11 }
0x2005   :  { %v3780_v52 = vpop.f32.mrb[50].mxu1 }
0x2006   :  { %v3781_v35 = vadd.f32 %v7818_v31, %v3780_v52  ;;  %v5810_v58 = vpop.f32.mrb[51].mxu1 }
0x2008   :  { %v3784_v63 = vmax.f32 %v3781_v35, 0.0 }
0x200a   :  { %5828 = vmatmul.mubr.msk.f32.vlgmr.msra.gmra.mrb[48].mxu0 %vm422_vm4, %v3784_v63 }
0x200b   :  { %6547 = vmatpush3.bf16.msra.mxu0 %v7723_v42  ;;  %5853 = vmatprep.mubr.msk.f32.mxu0 %vm6660_vm1, %v6659_v2  ;;  %v3859_v42 = vstv %s4284_s4 }
0x200c   :  { %6548 = vmatprep.subr.bf16.mxu0 %v6661_v11 }
0x200f   :  { %6550 = vmatpush3.bf16.msra.mxu0 %v7735_v46 }
0x2010   :  { %6551 = vmatprep.subr.bf16.mxu0 %v6661_v11 }
0x2013   :  { %6553 = vmatpush3.bf16.msra.mxu0 %v7748_v55 }
0x2014   :  { %6554 = vmatprep.subr.bf16.mxu0 %v6661_v11 }
0x2017   :  { %6556 = vmatpush3.bf16.msra.mxu0 %v7758_v6 }
0x2018   :  { %6569 = vmatprep.subr.bf16.mxu0 %v6661_v11 }
0x20dd   :  { %v3855_v30 = vpop.f32.mrb[48].mxu0 }
0x20de   :  { %v3856_v23 = vadd.f32 %v7835_v0, %v3855_v30  ;;  %v5829_v27 = vpop.f32.mrb[49].mxu0 }
0x20e0   :  { %v3860_v38 = vmul.f32 %v3859_v42, %v3856_v23 }
0x20e2   :  { %v3861_v8 = vadd.f32 %v3860_v38, %v3636_v20 }
0x20e4   :  { %4093 = vrot.lane.b32.xlu1 %v3861_v8, %s6664_s18  ;;  %5835 = vmatmul.mubr.msk.f32.vlgmr.msra.gmra.mrb[52].mxu1 %vm132_vm3, %v3861_v8 }
0x20e5   :  { %6559 = vmatpush3.bf16.msra.mxu1 %v7771_v61  ;;  %5872 = vmatprep.mubr.msk.f32.mxu1 %vm6660_vm1, %v6659_v2 }
0x20e6   :  { %6560 = vmatprep.subr.bf16.mxu1 %v6661_v11 }
0x20e9   :  { %6562 = vmatpush3.bf16.msra.mxu1 %v7777_v28 }
0x20ea   :  { %6563 = vmatprep.subr.bf16.mxu1 %v6661_v11 }
0x20ed   :  { %6565 = vmatpush3.bf16.msra.mxu1 %v7787_v7  ;;  %v4107_v7 = vld [vmem:[%s7977_s2 + $0x378] sm:$0xff] }
0x20ee   :  { %6566 = vmatprep.subr.bf16.mxu1 %v6661_v11 }
0x20f1   :  { %6568 = vmatpush3.bf16.msra.mxu1 %v7811_v34  ;;  %v4110_v34 = vld [vmem:[%s7977_s2 + $0x390] sm:$0xff] }
0x2156   :  { %v4094_v5 = vpop.permute.xlu1 %4093 }
0x2157   :  { %v4103_v37 = vsel %vm4102_vm13, %v7887_v26, %v4094_v5 }
0x21b7   :  { %v3931_v46 = vpop.f32.mrb[52].mxu1 }
0x21b8   :  { %v3932_v55 = vadd.f32 %v7797_v13, %v3931_v46  ;;  %v5836_v6 = vpop.f32.mrb[53].mxu1  ;;  %v4108_v13 = vld [vmem:[%s7977_s2 + $0x380] sm:$0xff] }
0x21ba   :  { %v3935_v61 = vmax.f32 %v3932_v55, 0.0 }
0x21bc   :  { %5854 = vmatmul.mubr.msk.f32.vlgmr.msra.gmra.mrb[50].mxu0 %vm422_vm4, %v3935_v61 }
0x21bd   :  { %5895 = vmatprep.mubr.msk.f32.mxu0 %vm6660_vm1, %v6659_v2  ;;  %v6570_v2 = vpack.c.bf16 %v4108_v13, %v4107_v7 }
0x21bf   :  { %6571 = vmatpush3.bf16.msra.mxu0 %v6570_v2 }
0x21c0   :  { %6572 = vmatprep.subr.bf16.mxu0 %v6661_v11 }
0x228f   :  { %v4005_v29 = vpop.f32.mrb[50].mxu0 }
0x2290   :  { %v4006_v28 = vadd.f32 %v7818_v31, %v4005_v29  ;;  %v5855_v51 = vpop.f32.mrb[51].mxu0  ;;  %v6573_v31 = vpack.c.bf16 %v4110_v34, %v4109_v25 }
0x2292   :  { %v4009_v3 = vmax.f32 %v4006_v28, 0.0  ;;  %6574 = vmatpush3.bf16.msra.mxu0 %v6573_v31 }
0x2293   :  { %6575 = vmatprep.subr.bf16.mxu0 %v6661_v11 }
0x2294   :  { %5873 = vmatmul.mubr.msk.f32.vlgmr.msra.gmra.mrb[54].mxu1 %vm422_vm4, %v4009_v3 }
0x2296   :  { %6577 = vmatpush3.bf16.msra.mxu0 %v6576_v53 }
0x2297   :  { %6578 = vmatprep.subr.bf16.mxu0 %v6661_v11 }
0x229a   :  { %6580 = vmatpush3.bf16.msra.mxu0 %v6579_v43 }
0x229b   :  { %6581 = vmatprep.subr.bf16.mxu0 %v6661_v11  ;;  %v4290_v11 = vld [vmem:[%s7977_s2 + $0x3c8] ss:$0 sm:$0xff] }
0x229e   :  { %6583 = vmatpush3.bf16.msra.mxu0 %v6582_v21 }
0x2367   :  { %v4080_v47 = vpop.f32.mrb[54].mxu1 }
0x2368   :  { %v4081_v59 = vadd.f32 %v7835_v0, %v4080_v47  ;;  %v5874_v44 = vpop.f32.mrb[55].mxu1 }
0x236a   :  { %v4085_v62 = vmul.f32 %v4084_v16, %v4081_v59 }
0x236c   :  { %v4086_v4 = vadd.f32 %v4085_v62, %v3861_v8 }
0x236e   :  { %4097 = vrot.lane.b32.xlu1 %v4086_v4, %s6665_s13 }
0x23e0   :  { %v4098_v12 = vpop.permute.xlu1 %4097 }
0x23e1   :  { %v4104_v41 = vsel %vm422_vm4, %v4103_v37, %v4098_v12 }
0x23e2   :  { %4106 = vst.msk [vmem:[%s7980_s5] sm:$0xff] %vm4105_vm14, %v4104_v41  ;;  %5896 = vmatmul.mubr.msk.f32.vlgmr.msra.gmra.mrb[52].mxu0 %vm4105_vm14, %v4104_v41 }
0x24b5   :  { %v4191_v0 = vpop.f32.mrb[52].mxu0 }
0x24b6   :  { %v4192_v10 = vadd.f32 %v4290_v11, %v4191_v0  ;;  %v5897_v32 = vpop.f32.mrb[53].mxu0 }
0x24b8   :  { %4195 = vst.msk [vmem:[%s7981_s6] sm:$0xff] %vm4105_vm14, %v4192_v10 }
0x24b9   :  { %4208 = vsyncpa [#allocation3], 1 }

</bundles_post_ra>
